<compile_context>
chip_gen: v7x
topology: tpu7x:2x2x1
jax: 0.10.0
libtpu: 0.0.40
codegen_flags: <defaults>
</compile_context>

<pallas_src>
import jax
import jax.numpy as jnp
import numpy as np
from jax.experimental import pallas as pl
from jax.experimental.pallas import tpu as pltpu

K_SIZE = 5
STRIDE = 2
PAD = 2
CHANNELS = [(1, 16), (16, 32), (32, 64), (64, 128)]
MAX_BATCH_BLOCK = 128  # batch rows handled per grid step


def _out_len(padded_len):
    return (padded_len - K_SIZE) // STRIDE + 1


def _encoder_kernel(x_ref, w1_ref, b1_ref, w2_ref, b2_ref, w3_ref, b3_ref,
                    w4_ref, b4_ref, o_ref, a1_ref, a2_ref, a3_ref):
    nb = x_ref.shape[0]

    # Zero only the 2-row halos at both ends of each intermediate activation.
    # Re-done every grid step so iterations stay independent ("parallel"-safe).
    for ref in (a1_ref, a2_ref, a3_ref):
        c = ref.shape[2]
        ref[:, :PAD, :] = jnp.zeros((nb, PAD, c), jnp.float32)
        ref[:, ref.shape[1] - PAD:, :] = jnp.zeros((nb, PAD, c), jnp.float32)

    # ---- Layer 1: Conv1d(1 -> 16) on the VPU (5 broadcast multiply-adds). ----
    l1 = _out_len(x_ref.shape[1])                             # 128
    c1 = w1_ref.shape[2]                                      # 16
    acc = jnp.zeros((nb, l1, c1), jnp.float32)
    for k in range(K_SIZE):
        tap = x_ref[:, pl.ds(k, l1, stride=STRIDE), :]        # (nb, l1, 1) f32
        acc = acc + tap * w1_ref[k]                           # (1, 16) lane-broadcast
    a1_ref[:, PAD:PAD + l1, :] = jnp.maximum(acc + b1_ref[...], 0.0)

    # ---- Layers 2-4: 5 strided taps feeding the MXU (bf16 x bf16 -> f32 acc). ----
    def conv_relu_mxu(in_ref, w_ref, b_ref):
        l_out = _out_len(in_ref.shape[1])
        c_in = in_ref.shape[2]
        c_out = w_ref.shape[2]
        m = nb * l_out
        acc = jnp.zeros((m, c_out), jnp.float32)
        for k in range(K_SIZE):
            tap = in_ref[:, pl.ds(k, l_out, stride=STRIDE), :]    # (nb, l_out, c_in)
            tap2d = tap.reshape(m, c_in).astype(jnp.bfloat16)     # leading-dim merge (free)
            acc = acc + jnp.dot(tap2d, w_ref[k],                  # w_ref[k]: (c_in, c_out) bf16
                                preferred_element_type=jnp.float32)
        out = jnp.maximum(acc + b_ref[...], 0.0)                  # bias + ReLU in f32
        return out.reshape(nb, l_out, c_out), l_out

    a2, l2 = conv_relu_mxu(a1_ref, w2_ref, b2_ref)
    a2_ref[:, PAD:PAD + l2, :] = a2

    a3, l3 = conv_relu_mxu(a2_ref, w3_ref, b3_ref)
    a3_ref[:, PAD:PAD + l3, :] = a3

    a4, _ = conv_relu_mxu(a3_ref, w4_ref, b4_ref)
    o_ref[...] = a4.astype(o_ref.dtype)                           # (nb, 16, 128) lane-dense


def _prep_params(params):
    """PyTorch (C_out, C_in, K) weights -> kernel layout (K, C_in, C_out)."""
    flat = []
    for i, (w, b) in enumerate(params):
        w_t = jnp.transpose(w, (2, 1, 0))                 # (K, C_in, C_out)
        if i > 0:                                         # MXU layers: bf16 operands
            w_t = w_t.astype(jnp.bfloat16)
        flat.append(w_t)
        flat.append(b.reshape(1, -1).astype(jnp.float32))
    return flat


@jax.jit
def encoder_forward(x, params):
    """x: (N, 1, L) float32 (PyTorch NCW) -> (N, 128, L//16)."""
    n, c_in, l = x.shape
    assert c_in == 1
    lp = l + 2 * PAD
    l1 = _out_len(lp)
    l2 = _out_len(l1 + 2 * PAD)
    l3 = _out_len(l2 + 2 * PAD)
    l4 = _out_len(l3 + 2 * PAD)
    c1, c2, c3, c4 = (co for _, co in CHANNELS)

    nb = min(n, MAX_BATCH_BLOCK)
    grid = (pl.cdiv(n, nb),)

    # Channel-last, pre-padded input (tiny; the only pre-kernel layout op).
    x_pad = jnp.pad(x.reshape(n, l), ((0, 0), (PAD, PAD))).reshape(n, lp, 1)
    flat_params = _prep_params(params)

    # Advisory cost estimate for the XLA scheduler.
    flops = 0
    bytes_accessed = x_pad.size * 4 + n * l4 * c4 * 4
    l_cur = l
    for (ci, co), (w, b) in zip(CHANNELS, params):
        l_cur = (l_cur + 2 * PAD - K_SIZE) // STRIDE + 1
        flops += 2 * n * l_cur * ci * K_SIZE * co
        bytes_accessed += w.size * 4 + b.size * 4

    # Input tiled over batch; weights/biases are whole-array blocks (fetched once,
    # block index never changes across grid steps).
    in_specs = [pl.BlockSpec((nb, lp, 1), lambda i: (i, 0, 0))]
    for w, b in zip(flat_params[0::2], flat_params[1::2]):
        in_specs.append(pl.BlockSpec(w.shape, lambda i: (0, 0, 0)))
        in_specs.append(pl.BlockSpec(b.shape, lambda i: (0, 0)))

    out_nlc = pl.pallas_call(
        _encoder_kernel,
        out_shape=jax.ShapeDtypeStruct((n, l4, c4), x.dtype),
        grid=grid,
        in_specs=in_specs,
        out_specs=pl.BlockSpec((nb, l4, c4), lambda i: (i, 0, 0)),
        scratch_shapes=[
            pltpu.VMEM((nb, l1 + 2 * PAD, c1), jnp.float32),
            pltpu.VMEM((nb, l2 + 2 * PAD, c2), jnp.float32),
            pltpu.VMEM((nb, l3 + 2 * PAD, c3), jnp.float32),
        ],
        compiler_params=pltpu.CompilerParams(
            dimension_semantics=("parallel",)),
        cost_estimate=pl.CostEstimate(flops=flops, transcendentals=0,
                                      bytes_accessed=bytes_accessed),
    )(x_pad, *flat_params)

    # Single boundary transpose back to PyTorch NCW.
    return jnp.transpose(out_nlc, (0, 2, 1))


def init_params(key):
    """Deterministic PyTorch-style (Kaiming-uniform-ish) init for the 4 conv layers."""
    params = []
    for i, (cin, cout) in enumerate(CHANNELS):
        kw, kb = jax.random.split(jax.random.fold_in(key, i))
        bound = 1.0 / np.sqrt(cin * K_SIZE)
        w = jax.random.uniform(kw, (cout, cin, K_SIZE), jnp.float32, -bound, bound)
        b = jax.random.uniform(kb, (cout,), jnp.float32, -bound, bound)
        params.append((w, b))
    return params


def encoder_reference(x, params):
    # Pure-JAX reference (lax conv, f32 HIGHEST) to validate the Pallas path.
    for w, b in params:
        y = jax.lax.conv_general_dilated(
            x, w, window_strides=(STRIDE,), padding=[(PAD, PAD)],
            dimension_numbers=("NCH", "OIH", "NCH"),
            precision=jax.lax.Precision.HIGHEST)
        x = jax.nn.relu(y + b[None, :, None])
    return x


if __name__ == "__main__":
    root = jax.random.PRNGKey(0)
    kx, kp = jax.random.split(root)
    params = init_params(kp)
    x = jax.random.normal(kx, (2, 1, 256), jnp.float32)      # (N=2, C=1, L=256)

    out = jax.block_until_ready(encoder_forward(x, params))
    assert out.shape == (2, 128, 16), out.shape              # L: 256 -> 128 -> 64 -> 32 -> 16

    ref = jax.block_until_ready(encoder_reference(x, params))
    # bf16 MXU operands with f32 accumulation -> ~1e-3-level error vs f32 reference.
    np.testing.assert_allclose(np.asarray(out), np.asarray(ref), rtol=2e-2, atol=2e-2)

    print("KERNEL_OK")
</pallas_src>

<mosaic_0001>
module attributes {stable_mosaic.version = 11 : i64} {
  func.func @_encoder_kernel(%arg0: i32, %arg1: memref<2x260x1xf32, #tpu.memory_space<vmem>>, %arg2: memref<5x1x16xf32, #tpu.memory_space<vmem>>, %arg3: memref<1x16xf32, #tpu.memory_space<vmem>>, %arg4: memref<5x16x32xbf16, #tpu.memory_space<vmem>>, %arg5: memref<1x32xf32, #tpu.memory_space<vmem>>, %arg6: memref<5x32x64xbf16, #tpu.memory_space<vmem>>, %arg7: memref<1x64xf32, #tpu.memory_space<vmem>>, %arg8: memref<5x64x128xbf16, #tpu.memory_space<vmem>>, %arg9: memref<1x128xf32, #tpu.memory_space<vmem>>, %arg10: memref<2x16x128xf32, #tpu.memory_space<vmem>>, %arg11: memref<2x132x16xf32, #tpu.memory_space<vmem>>, %arg12: memref<2x68x32xf32, #tpu.memory_space<vmem>>, %arg13: memref<2x36x64xf32, #tpu.memory_space<vmem>>) attributes {dimension_semantics = [#tpu.dimension_semantics<parallel>], iteration_bounds = array<i64: 1>, scalar_prefetch = 0 : i64, scratch_operands = 3 : i64, tpu.core_type = #tpu.core_type<tc>, window_params = [{transform_indices = @transform_0, window_bounds = array<i64: 2, 260, 1>}, {pipeline_mode = #tpu.pipeline_mode<synchronous>, transform_indices = @transform_1, window_bounds = array<i64: 5, 1, 16>}, {pipeline_mode = #tpu.pipeline_mode<synchronous>, transform_indices = @transform_2, window_bounds = array<i64: 1, 16>}, {pipeline_mode = #tpu.pipeline_mode<synchronous>, transform_indices = @transform_3, window_bounds = array<i64: 5, 16, 32>}, {pipeline_mode = #tpu.pipeline_mode<synchronous>, transform_indices = @transform_4, window_bounds = array<i64: 1, 32>}, {pipeline_mode = #tpu.pipeline_mode<synchronous>, transform_indices = @transform_5, window_bounds = array<i64: 5, 32, 64>}, {pipeline_mode = #tpu.pipeline_mode<synchronous>, transform_indices = @transform_6, window_bounds = array<i64: 1, 64>}, {pipeline_mode = #tpu.pipeline_mode<synchronous>, transform_indices = @transform_7, window_bounds = array<i64: 5, 64, 128>}, {pipeline_mode = #tpu.pipeline_mode<synchronous>, transform_indices = @transform_8, window_bounds = array<i64: 1, 128>}, {transform_indices = @transform_9, window_bounds = array<i64: 2, 16, 128>}]} {
    %cst = arith.constant 0.000000e+00 : f32
    %0 = vector.broadcast %cst : f32 to vector<2x2x16xf32>
    %c0 = arith.constant 0 : index
    %c0_0 = arith.constant 0 : index
    %c0_1 = arith.constant 0 : index
    %1 = vector.load %arg11[%c0, %c0_0, %c0_1] : memref<2x132x16xf32, #tpu.memory_space<vmem>>, vector<2x2x16xf32>
    tpu.vector_store %arg11[%c0, %c0_0, %c0_1], %0 {strides = array<i32>} : memref<2x132x16xf32, #tpu.memory_space<vmem>>, vector<2x2x16xf32>,
    %cst_2 = arith.constant 0.000000e+00 : f32
    %2 = vector.broadcast %cst_2 : f32 to vector<2x2x16xf32>
    %c0_3 = arith.constant 0 : index
    %c130 = arith.constant 130 : index
    %c0_4 = arith.constant 0 : index
    %3 = vector.load %arg11[%c0_3, %c130, %c0_4] : memref<2x132x16xf32, #tpu.memory_space<vmem>>, vector<2x2x16xf32>
    tpu.vector_store %arg11[%c0_3, %c130, %c0_4], %2 {strides = array<i32>} : memref<2x132x16xf32, #tpu.memory_space<vmem>>, vector<2x2x16xf32>,
    %cst_5 = arith.constant 0.000000e+00 : f32
    %4 = vector.broadcast %cst_5 : f32 to vector<2x2x32xf32>
    %c0_6 = arith.constant 0 : index
    %c0_7 = arith.constant 0 : index
    %c0_8 = arith.constant 0 : index
    %5 = vector.load %arg12[%c0_6, %c0_7, %c0_8] : memref<2x68x32xf32, #tpu.memory_space<vmem>>, vector<2x2x32xf32>
    tpu.vector_store %arg12[%c0_6, %c0_7, %c0_8], %4 {strides = array<i32>} : memref<2x68x32xf32, #tpu.memory_space<vmem>>, vector<2x2x32xf32>,
    %cst_9 = arith.constant 0.000000e+00 : f32
    %6 = vector.broadcast %cst_9 : f32 to vector<2x2x32xf32>
    %c0_10 = arith.constant 0 : index
    %c66 = arith.constant 66 : index
    %c0_11 = arith.constant 0 : index
    %7 = vector.load %arg12[%c0_10, %c66, %c0_11] : memref<2x68x32xf32, #tpu.memory_space<vmem>>, vector<2x2x32xf32>
    tpu.vector_store %arg12[%c0_10, %c66, %c0_11], %6 {strides = array<i32>} : memref<2x68x32xf32, #tpu.memory_space<vmem>>, vector<2x2x32xf32>,
    %cst_12 = arith.constant 0.000000e+00 : f32
    %8 = vector.broadcast %cst_12 : f32 to vector<2x2x64xf32>
    %c0_13 = arith.constant 0 : index
    %c0_14 = arith.constant 0 : index
    %c0_15 = arith.constant 0 : index
    %9 = vector.load %arg13[%c0_13, %c0_14, %c0_15] : memref<2x36x64xf32, #tpu.memory_space<vmem>>, vector<2x2x64xf32>
    tpu.vector_store %arg13[%c0_13, %c0_14, %c0_15], %8 {strides = array<i32>} : memref<2x36x64xf32, #tpu.memory_space<vmem>>, vector<2x2x64xf32>,
    %cst_16 = arith.constant 0.000000e+00 : f32
    %10 = vector.broadcast %cst_16 : f32 to vector<2x2x64xf32>
    %c0_17 = arith.constant 0 : index
    %c34 = arith.constant 34 : index
    %c0_18 = arith.constant 0 : index
    %11 = vector.load %arg13[%c0_17, %c34, %c0_18] : memref<2x36x64xf32, #tpu.memory_space<vmem>>, vector<2x2x64xf32>
    tpu.vector_store %arg13[%c0_17, %c34, %c0_18], %10 {strides = array<i32>} : memref<2x36x64xf32, #tpu.memory_space<vmem>>, vector<2x2x64xf32>,
    %cst_19 = arith.constant 0.000000e+00 : f32
    %12 = vector.broadcast %cst_19 : f32 to vector<2x128x16xf32>
    %c0_20 = arith.constant 0 : index
    %c0_21 = arith.constant 0 : index
    %c0_22 = arith.constant 0 : index
    %13 = tpu.strided_load %arg1[%c0_20, %c0_21, %c0_22] {strides = array<i32: 1, 2, 1>} : memref<2x260x1xf32, #tpu.memory_space<vmem>>, vector<2x128x1xf32>
    %c0_23 = arith.constant 0 : index
    %c0_24 = arith.constant 0 : index
    %c0_25 = arith.constant 0 : index
    %14 = vector.load %arg2[%c0_23, %c0_24, %c0_25] : memref<5x1x16xf32, #tpu.memory_space<vmem>>, vector<1x1x16xf32>
    %15 = vector.shape_cast %14 : vector<1x1x16xf32> to vector<1x16xf32>
    %16 = vector.shape_cast %15 : vector<1x16xf32> to vector<1x1x16xf32>
    %17 = vector.broadcast %13 : vector<2x128x1xf32> to vector<2x128x16xf32>
    %18 = vector.broadcast %16 : vector<1x1x16xf32> to vector<2x128x16xf32>
    %19 = arith.mulf %17, %18 : vector<2x128x16xf32>
    %20 = arith.addf %12, %19 : vector<2x128x16xf32>
    %c0_26 = arith.constant 0 : index
    %c1 = arith.constant 1 : index
    %c0_27 = arith.constant 0 : index
    %21 = tpu.strided_load %arg1[%c0_26, %c1, %c0_27] {strides = array<i32: 1, 2, 1>} : memref<2x260x1xf32, #tpu.memory_space<vmem>>, vector<2x128x1xf32>
    %c1_28 = arith.constant 1 : index
    %c0_29 = arith.constant 0 : index
    %c0_30 = arith.constant 0 : index
    %22 = vector.load %arg2[%c1_28, %c0_29, %c0_30] : memref<5x1x16xf32, #tpu.memory_space<vmem>>, vector<1x1x16xf32>
    %23 = vector.shape_cast %22 : vector<1x1x16xf32> to vector<1x16xf32>
    %24 = vector.shape_cast %23 : vector<1x16xf32> to vector<1x1x16xf32>
    %25 = vector.broadcast %21 : vector<2x128x1xf32> to vector<2x128x16xf32>
    %26 = vector.broadcast %24 : vector<1x1x16xf32> to vector<2x128x16xf32>
    %27 = arith.mulf %25, %26 : vector<2x128x16xf32>
    %28 = arith.addf %20, %27 : vector<2x128x16xf32>
    %c0_31 = arith.constant 0 : index
    %c2 = arith.constant 2 : index
    %c0_32 = arith.constant 0 : index
    %29 = tpu.strided_load %arg1[%c0_31, %c2, %c0_32] {strides = array<i32: 1, 2, 1>} : memref<2x260x1xf32, #tpu.memory_space<vmem>>, vector<2x128x1xf32>
    %c2_33 = arith.constant 2 : index
    %c0_34 = arith.constant 0 : index
    %c0_35 = arith.constant 0 : index
    %30 = vector.load %arg2[%c2_33, %c0_34, %c0_35] : memref<5x1x16xf32, #tpu.memory_space<vmem>>, vector<1x1x16xf32>
    %31 = vector.shape_cast %30 : vector<1x1x16xf32> to vector<1x16xf32>
    %32 = vector.shape_cast %31 : vector<1x16xf32> to vector<1x1x16xf32>
    %33 = vector.broadcast %29 : vector<2x128x1xf32> to vector<2x128x16xf32>
    %34 = vector.broadcast %32 : vector<1x1x16xf32> to vector<2x128x16xf32>
    %35 = arith.mulf %33, %34 : vector<2x128x16xf32>
    %36 = arith.addf %28, %35 : vector<2x128x16xf32>
    %c0_36 = arith.constant 0 : index
    %c3 = arith.constant 3 : index
    %c0_37 = arith.constant 0 : index
    %37 = tpu.strided_load %arg1[%c0_36, %c3, %c0_37] {strides = array<i32: 1, 2, 1>} : memref<2x260x1xf32, #tpu.memory_space<vmem>>, vector<2x128x1xf32>
    %c3_38 = arith.constant 3 : index
    %c0_39 = arith.constant 0 : index
    %c0_40 = arith.constant 0 : index
    %38 = vector.load %arg2[%c3_38, %c0_39, %c0_40] : memref<5x1x16xf32, #tpu.memory_space<vmem>>, vector<1x1x16xf32>
    %39 = vector.shape_cast %38 : vector<1x1x16xf32> to vector<1x16xf32>
    %40 = vector.shape_cast %39 : vector<1x16xf32> to vector<1x1x16xf32>
    %41 = vector.broadcast %37 : vector<2x128x1xf32> to vector<2x128x16xf32>
    %42 = vector.broadcast %40 : vector<1x1x16xf32> to vector<2x128x16xf32>
    %43 = arith.mulf %41, %42 : vector<2x128x16xf32>
    %44 = arith.addf %36, %43 : vector<2x128x16xf32>
    %c0_41 = arith.constant 0 : index
    %c4 = arith.constant 4 : index
    %c0_42 = arith.constant 0 : index
    %45 = tpu.strided_load %arg1[%c0_41, %c4, %c0_42] {strides = array<i32: 1, 2, 1>} : memref<2x260x1xf32, #tpu.memory_space<vmem>>, vector<2x128x1xf32>
    %c4_43 = arith.constant 4 : index
    %c0_44 = arith.constant 0 : index
    %c0_45 = arith.constant 0 : index
    %46 = vector.load %arg2[%c4_43, %c0_44, %c0_45] : memref<5x1x16xf32, #tpu.memory_space<vmem>>, vector<1x1x16xf32>
    %47 = vector.shape_cast %46 : vector<1x1x16xf32> to vector<1x16xf32>
    %48 = vector.shape_cast %47 : vector<1x16xf32> to vector<1x1x16xf32>
    %49 = vector.broadcast %45 : vector<2x128x1xf32> to vector<2x128x16xf32>
    %50 = vector.broadcast %48 : vector<1x1x16xf32> to vector<2x128x16xf32>
    %51 = arith.mulf %49, %50 : vector<2x128x16xf32>
    %52 = arith.addf %44, %51 : vector<2x128x16xf32>
    %c0_46 = arith.constant 0 : index
    %c0_47 = arith.constant 0 : index
    %53 = vector.load %arg3[%c0_46, %c0_47] : memref<1x16xf32, #tpu.memory_space<vmem>>, vector<1x16xf32>
    %54 = vector.shape_cast %53 : vector<1x16xf32> to vector<1x1x16xf32>
    %55 = vector.broadcast %54 : vector<1x1x16xf32> to vector<2x128x16xf32>
    %56 = arith.addf %52, %55 : vector<2x128x16xf32>
    %cst_48 = arith.constant 0.000000e+00 : f32
    %57 = vector.broadcast %cst_48 : f32 to vector<2x128x16xf32>
    %58 = arith.maximumf %56, %57 : vector<2x128x16xf32>
    %c0_49 = arith.constant 0 : index
    %c2_50 = arith.constant 2 : index
    %c0_51 = arith.constant 0 : index
    %59 = vector.load %arg11[%c0_49, %c2_50, %c0_51] : memref<2x132x16xf32, #tpu.memory_space<vmem>>, vector<2x128x16xf32>
    tpu.vector_store %arg11[%c0_49, %c2_50, %c0_51], %58 {strides = array<i32>} : memref<2x132x16xf32, #tpu.memory_space<vmem>>, vector<2x128x16xf32>,
    %cst_52 = arith.constant 0.000000e+00 : f32
    %60 = vector.broadcast %cst_52 : f32 to vector<128x32xf32>
    %c0_53 = arith.constant 0 : index
    %c0_54 = arith.constant 0 : index
    %c0_55 = arith.constant 0 : index
    %61 = tpu.strided_load %arg11[%c0_53, %c0_54, %c0_55] {strides = array<i32: 1, 2, 1>} : memref<2x132x16xf32, #tpu.memory_space<vmem>>, vector<2x64x16xf32>
    %62 = vector.shape_cast %61 : vector<2x64x16xf32> to vector<128x16xf32>
    %63 = arith.truncf %62 : vector<128x16xf32> to vector<128x16xbf16>
    %c0_56 = arith.constant 0 : index
    %c0_57 = arith.constant 0 : index
    %c0_58 = arith.constant 0 : index
    %64 = vector.load %arg4[%c0_56, %c0_57, %c0_58] : memref<5x16x32xbf16, #tpu.memory_space<vmem>>, vector<1x16x32xbf16>
    %65 = vector.shape_cast %64 : vector<1x16x32xbf16> to vector<16x32xbf16>
    %cst_59 = arith.constant dense<0.000000e+00> : vector<128x32xf32>
    %66 = tpu.matmul %63, %65, %cst_59 {dimension_numbers = #tpu.dot_dimension_numbers<[1], [0], [0], [1], [0, 0, 1, 1], [], []>} : vector<128x16xbf16>, vector<16x32xbf16>, vector<128x32xf32> -> vector<128x32xf32>
    %67 = arith.addf %60, %66 : vector<128x32xf32>
    %c0_60 = arith.constant 0 : index
    %c1_61 = arith.constant 1 : index
    %c0_62 = arith.constant 0 : index
    %68 = tpu.strided_load %arg11[%c0_60, %c1_61, %c0_62] {strides = array<i32: 1, 2, 1>} : memref<2x132x16xf32, #tpu.memory_space<vmem>>, vector<2x64x16xf32>
    %69 = vector.shape_cast %68 : vector<2x64x16xf32> to vector<128x16xf32>
    %70 = arith.truncf %69 : vector<128x16xf32> to vector<128x16xbf16>
    %c1_63 = arith.constant 1 : index
    %c0_64 = arith.constant 0 : index
    %c0_65 = arith.constant 0 : index
    %71 = vector.load %arg4[%c1_63, %c0_64, %c0_65] : memref<5x16x32xbf16, #tpu.memory_space<vmem>>, vector<1x16x32xbf16>
    %72 = vector.shape_cast %71 : vector<1x16x32xbf16> to vector<16x32xbf16>
    %cst_66 = arith.constant dense<0.000000e+00> : vector<128x32xf32>
    %73 = tpu.matmul %70, %72, %cst_66 {dimension_numbers = #tpu.dot_dimension_numbers<[1], [0], [0], [1], [0, 0, 1, 1], [], []>} : vector<128x16xbf16>, vector<16x32xbf16>, vector<128x32xf32> -> vector<128x32xf32>
    %74 = arith.addf %67, %73 : vector<128x32xf32>
    %c0_67 = arith.constant 0 : index
    %c2_68 = arith.constant 2 : index
    %c0_69 = arith.constant 0 : index
    %75 = tpu.strided_load %arg11[%c0_67, %c2_68, %c0_69] {strides = array<i32: 1, 2, 1>} : memref<2x132x16xf32, #tpu.memory_space<vmem>>, vector<2x64x16xf32>
    %76 = vector.shape_cast %75 : vector<2x64x16xf32> to vector<128x16xf32>
    %77 = arith.truncf %76 : vector<128x16xf32> to vector<128x16xbf16>
    %c2_70 = arith.constant 2 : index
    %c0_71 = arith.constant 0 : index
    %c0_72 = arith.constant 0 : index
    %78 = vector.load %arg4[%c2_70, %c0_71, %c0_72] : memref<5x16x32xbf16, #tpu.memory_space<vmem>>, vector<1x16x32xbf16>
    %79 = vector.shape_cast %78 : vector<1x16x32xbf16> to vector<16x32xbf16>
    %cst_73 = arith.constant dense<0.000000e+00> : vector<128x32xf32>
    %80 = tpu.matmul %77, %79, %cst_73 {dimension_numbers = #tpu.dot_dimension_numbers<[1], [0], [0], [1], [0, 0, 1, 1], [], []>} : vector<128x16xbf16>, vector<16x32xbf16>, vector<128x32xf32> -> vector<128x32xf32>
    %81 = arith.addf %74, %80 : vector<128x32xf32>
    %c0_74 = arith.constant 0 : index
    %c3_75 = arith.constant 3 : index
    %c0_76 = arith.constant 0 : index
    %82 = tpu.strided_load %arg11[%c0_74, %c3_75, %c0_76] {strides = array<i32: 1, 2, 1>} : memref<2x132x16xf32, #tpu.memory_space<vmem>>, vector<2x64x16xf32>
    %83 = vector.shape_cast %82 : vector<2x64x16xf32> to vector<128x16xf32>
    %84 = arith.truncf %83 : vector<128x16xf32> to vector<128x16xbf16>
    %c3_77 = arith.constant 3 : index
    %c0_78 = arith.constant 0 : index
    %c0_79 = arith.constant 0 : index
    %85 = vector.load %arg4[%c3_77, %c0_78, %c0_79] : memref<5x16x32xbf16, #tpu.memory_space<vmem>>, vector<1x16x32xbf16>
    %86 = vector.shape_cast %85 : vector<1x16x32xbf16> to vector<16x32xbf16>
    %cst_80 = arith.constant dense<0.000000e+00> : vector<128x32xf32>
    %87 = tpu.matmul %84, %86, %cst_80 {dimension_numbers = #tpu.dot_dimension_numbers<[1], [0], [0], [1], [0, 0, 1, 1], [], []>} : vector<128x16xbf16>, vector<16x32xbf16>, vector<128x32xf32> -> vector<128x32xf32>
    %88 = arith.addf %81, %87 : vector<128x32xf32>
    %c0_81 = arith.constant 0 : index
    %c4_82 = arith.constant 4 : index
    %c0_83 = arith.constant 0 : index
    %89 = tpu.strided_load %arg11[%c0_81, %c4_82, %c0_83] {strides = array<i32: 1, 2, 1>} : memref<2x132x16xf32, #tpu.memory_space<vmem>>, vector<2x64x16xf32>
    %90 = vector.shape_cast %89 : vector<2x64x16xf32> to vector<128x16xf32>
    %91 = arith.truncf %90 : vector<128x16xf32> to vector<128x16xbf16>
    %c4_84 = arith.constant 4 : index
    %c0_85 = arith.constant 0 : index
    %c0_86 = arith.constant 0 : index
    %92 = vector.load %arg4[%c4_84, %c0_85, %c0_86] : memref<5x16x32xbf16, #tpu.memory_space<vmem>>, vector<1x16x32xbf16>
    %93 = vector.shape_cast %92 : vector<1x16x32xbf16> to vector<16x32xbf16>
    %cst_87 = arith.constant dense<0.000000e+00> : vector<128x32xf32>
    %94 = tpu.matmul %91, %93, %cst_87 {dimension_numbers = #tpu.dot_dimension_numbers<[1], [0], [0], [1], [0, 0, 1, 1], [], []>} : vector<128x16xbf16>, vector<16x32xbf16>, vector<128x32xf32> -> vector<128x32xf32>
    %95 = arith.addf %88, %94 : vector<128x32xf32>
    %c0_88 = arith.constant 0 : index
    %c0_89 = arith.constant 0 : index
    %96 = vector.load %arg5[%c0_88, %c0_89] : memref<1x32xf32, #tpu.memory_space<vmem>>, vector<1x32xf32>
    %97 = vector.broadcast %96 : vector<1x32xf32> to vector<128x32xf32>
    %98 = arith.addf %95, %97 : vector<128x32xf32>
    %cst_90 = arith.constant 0.000000e+00 : f32
    %99 = vector.broadcast %cst_90 : f32 to vector<128x32xf32>
    %100 = arith.maximumf %98, %99 : vector<128x32xf32>
    %101 = vector.shape_cast %100 : vector<128x32xf32> to vector<2x64x32xf32>
    %c0_91 = arith.constant 0 : index
    %c2_92 = arith.constant 2 : index
    %c0_93 = arith.constant 0 : index
    %102 = vector.load %arg12[%c0_91, %c2_92, %c0_93] : memref<2x68x32xf32, #tpu.memory_space<vmem>>, vector<2x64x32xf32>
    tpu.vector_store %arg12[%c0_91, %c2_92, %c0_93], %101 {strides = array<i32>} : memref<2x68x32xf32, #tpu.memory_space<vmem>>, vector<2x64x32xf32>,
    %cst_94 = arith.constant 0.000000e+00 : f32
    %103 = vector.broadcast %cst_94 : f32 to vector<64x64xf32>
    %c0_95 = arith.constant 0 : index
    %c0_96 = arith.constant 0 : index
    %c0_97 = arith.constant 0 : index
    %104 = tpu.strided_load %arg12[%c0_95, %c0_96, %c0_97] {strides = array<i32: 1, 2, 1>} : memref<2x68x32xf32, #tpu.memory_space<vmem>>, vector<2x32x32xf32>
    %105 = vector.shape_cast %104 : vector<2x32x32xf32> to vector<64x32xf32>
    %106 = arith.truncf %105 : vector<64x32xf32> to vector<64x32xbf16>
    %c0_98 = arith.constant 0 : index
    %c0_99 = arith.constant 0 : index
    %c0_100 = arith.constant 0 : index
    %107 = vector.load %arg6[%c0_98, %c0_99, %c0_100] : memref<5x32x64xbf16, #tpu.memory_space<vmem>>, vector<1x32x64xbf16>
    %108 = vector.shape_cast %107 : vector<1x32x64xbf16> to vector<32x64xbf16>
    %cst_101 = arith.constant dense<0.000000e+00> : vector<64x64xf32>
    %109 = tpu.matmul %106, %108, %cst_101 {dimension_numbers = #tpu.dot_dimension_numbers<[1], [0], [0], [1], [0, 0, 1, 1], [], []>} : vector<64x32xbf16>, vector<32x64xbf16>, vector<64x64xf32> -> vector<64x64xf32>
    %110 = arith.addf %103, %109 : vector<64x64xf32>
    %c0_102 = arith.constant 0 : index
    %c1_103 = arith.constant 1 : index
    %c0_104 = arith.constant 0 : index
    %111 = tpu.strided_load %arg12[%c0_102, %c1_103, %c0_104] {strides = array<i32: 1, 2, 1>} : memref<2x68x32xf32, #tpu.memory_space<vmem>>, vector<2x32x32xf32>
    %112 = vector.shape_cast %111 : vector<2x32x32xf32> to vector<64x32xf32>
    %113 = arith.truncf %112 : vector<64x32xf32> to vector<64x32xbf16>
    %c1_105 = arith.constant 1 : index
    %c0_106 = arith.constant 0 : index
    %c0_107 = arith.constant 0 : index
    %114 = vector.load %arg6[%c1_105, %c0_106, %c0_107] : memref<5x32x64xbf16, #tpu.memory_space<vmem>>, vector<1x32x64xbf16>
    %115 = vector.shape_cast %114 : vector<1x32x64xbf16> to vector<32x64xbf16>
    %cst_108 = arith.constant dense<0.000000e+00> : vector<64x64xf32>
    %116 = tpu.matmul %113, %115, %cst_108 {dimension_numbers = #tpu.dot_dimension_numbers<[1], [0], [0], [1], [0, 0, 1, 1], [], []>} : vector<64x32xbf16>, vector<32x64xbf16>, vector<64x64xf32> -> vector<64x64xf32>
    %117 = arith.addf %110, %116 : vector<64x64xf32>
    %c0_109 = arith.constant 0 : index
    %c2_110 = arith.constant 2 : index
    %c0_111 = arith.constant 0 : index
    %118 = tpu.strided_load %arg12[%c0_109, %c2_110, %c0_111] {strides = array<i32: 1, 2, 1>} : memref<2x68x32xf32, #tpu.memory_space<vmem>>, vector<2x32x32xf32>
    %119 = vector.shape_cast %118 : vector<2x32x32xf32> to vector<64x32xf32>
    %120 = arith.truncf %119 : vector<64x32xf32> to vector<64x32xbf16>
    %c2_112 = arith.constant 2 : index
    %c0_113 = arith.constant 0 : index
    %c0_114 = arith.constant 0 : index
    %121 = vector.load %arg6[%c2_112, %c0_113, %c0_114] : memref<5x32x64xbf16, #tpu.memory_space<vmem>>, vector<1x32x64xbf16>
    %122 = vector.shape_cast %121 : vector<1x32x64xbf16> to vector<32x64xbf16>
    %cst_115 = arith.constant dense<0.000000e+00> : vector<64x64xf32>
    %123 = tpu.matmul %120, %122, %cst_115 {dimension_numbers = #tpu.dot_dimension_numbers<[1], [0], [0], [1], [0, 0, 1, 1], [], []>} : vector<64x32xbf16>, vector<32x64xbf16>, vector<64x64xf32> -> vector<64x64xf32>
    %124 = arith.addf %117, %123 : vector<64x64xf32>
    %c0_116 = arith.constant 0 : index
    %c3_117 = arith.constant 3 : index
    %c0_118 = arith.constant 0 : index
    %125 = tpu.strided_load %arg12[%c0_116, %c3_117, %c0_118] {strides = array<i32: 1, 2, 1>} : memref<2x68x32xf32, #tpu.memory_space<vmem>>, vector<2x32x32xf32>
    %126 = vector.shape_cast %125 : vector<2x32x32xf32> to vector<64x32xf32>
    %127 = arith.truncf %126 : vector<64x32xf32> to vector<64x32xbf16>
    %c3_119 = arith.constant 3 : index
    %c0_120 = arith.constant 0 : index
    %c0_121 = arith.constant 0 : index
    %128 = vector.load %arg6[%c3_119, %c0_120, %c0_121] : memref<5x32x64xbf16, #tpu.memory_space<vmem>>, vector<1x32x64xbf16>
    %129 = vector.shape_cast %128 : vector<1x32x64xbf16> to vector<32x64xbf16>
    %cst_122 = arith.constant dense<0.000000e+00> : vector<64x64xf32>
    %130 = tpu.matmul %127, %129, %cst_122 {dimension_numbers = #tpu.dot_dimension_numbers<[1], [0], [0], [1], [0, 0, 1, 1], [], []>} : vector<64x32xbf16>, vector<32x64xbf16>, vector<64x64xf32> -> vector<64x64xf32>
    %131 = arith.addf %124, %130 : vector<64x64xf32>
    %c0_123 = arith.constant 0 : index
    %c4_124 = arith.constant 4 : index
    %c0_125 = arith.constant 0 : index
    %132 = tpu.strided_load %arg12[%c0_123, %c4_124, %c0_125] {strides = array<i32: 1, 2, 1>} : memref<2x68x32xf32, #tpu.memory_space<vmem>>, vector<2x32x32xf32>
    %133 = vector.shape_cast %132 : vector<2x32x32xf32> to vector<64x32xf32>
    %134 = arith.truncf %133 : vector<64x32xf32> to vector<64x32xbf16>
    %c4_126 = arith.constant 4 : index
    %c0_127 = arith.constant 0 : index
    %c0_128 = arith.constant 0 : index
    %135 = vector.load %arg6[%c4_126, %c0_127, %c0_128] : memref<5x32x64xbf16, #tpu.memory_space<vmem>>, vector<1x32x64xbf16>
    %136 = vector.shape_cast %135 : vector<1x32x64xbf16> to vector<32x64xbf16>
    %cst_129 = arith.constant dense<0.000000e+00> : vector<64x64xf32>
    %137 = tpu.matmul %134, %136, %cst_129 {dimension_numbers = #tpu.dot_dimension_numbers<[1], [0], [0], [1], [0, 0, 1, 1], [], []>} : vector<64x32xbf16>, vector<32x64xbf16>, vector<64x64xf32> -> vector<64x64xf32>
    %138 = arith.addf %131, %137 : vector<64x64xf32>
    %c0_130 = arith.constant 0 : index
    %c0_131 = arith.constant 0 : index
    %139 = vector.load %arg7[%c0_130, %c0_131] : memref<1x64xf32, #tpu.memory_space<vmem>>, vector<1x64xf32>
    %140 = vector.broadcast %139 : vector<1x64xf32> to vector<64x64xf32>
    %141 = arith.addf %138, %140 : vector<64x64xf32>
    %cst_132 = arith.constant 0.000000e+00 : f32
    %142 = vector.broadcast %cst_132 : f32 to vector<64x64xf32>
    %143 = arith.maximumf %141, %142 : vector<64x64xf32>
    %144 = vector.shape_cast %143 : vector<64x64xf32> to vector<2x32x64xf32>
    %c0_133 = arith.constant 0 : index
    %c2_134 = arith.constant 2 : index
    %c0_135 = arith.constant 0 : index
    %145 = vector.load %arg13[%c0_133, %c2_134, %c0_135] : memref<2x36x64xf32, #tpu.memory_space<vmem>>, vector<2x32x64xf32>
    tpu.vector_store %arg13[%c0_133, %c2_134, %c0_135], %144 {strides = array<i32>} : memref<2x36x64xf32, #tpu.memory_space<vmem>>, vector<2x32x64xf32>,
    %cst_136 = arith.constant 0.000000e+00 : f32
    %146 = vector.broadcast %cst_136 : f32 to vector<32x128xf32>
    %c0_137 = arith.constant 0 : index
    %c0_138 = arith.constant 0 : index
    %c0_139 = arith.constant 0 : index
    %147 = tpu.strided_load %arg13[%c0_137, %c0_138, %c0_139] {strides = array<i32: 1, 2, 1>} : memref<2x36x64xf32, #tpu.memory_space<vmem>>, vector<2x16x64xf32>
    %148 = vector.shape_cast %147 : vector<2x16x64xf32> to vector<32x64xf32>
    %149 = arith.truncf %148 : vector<32x64xf32> to vector<32x64xbf16>
    %c0_140 = arith.constant 0 : index
    %c0_141 = arith.constant 0 : index
    %c0_142 = arith.constant 0 : index
    %150 = vector.load %arg8[%c0_140, %c0_141, %c0_142] : memref<5x64x128xbf16, #tpu.memory_space<vmem>>, vector<1x64x128xbf16>
    %151 = vector.shape_cast %150 : vector<1x64x128xbf16> to vector<64x128xbf16>
    %cst_143 = arith.constant dense<0.000000e+00> : vector<32x128xf32>
    %152 = tpu.matmul %149, %151, %cst_143 {dimension_numbers = #tpu.dot_dimension_numbers<[1], [0], [0], [1], [0, 0, 1, 1], [], []>} : vector<32x64xbf16>, vector<64x128xbf16>, vector<32x128xf32> -> vector<32x128xf32>
    %153 = arith.addf %146, %152 : vector<32x128xf32>
    %c0_144 = arith.constant 0 : index
    %c1_145 = arith.constant 1 : index
    %c0_146 = arith.constant 0 : index
    %154 = tpu.strided_load %arg13[%c0_144, %c1_145, %c0_146] {strides = array<i32: 1, 2, 1>} : memref<2x36x64xf32, #tpu.memory_space<vmem>>, vector<2x16x64xf32>
    %155 = vector.shape_cast %154 : vector<2x16x64xf32> to vector<32x64xf32>
    %156 = arith.truncf %155 : vector<32x64xf32> to vector<32x64xbf16>
    %c1_147 = arith.constant 1 : index
    %c0_148 = arith.constant 0 : index
    %c0_149 = arith.constant 0 : index
    %157 = vector.load %arg8[%c1_147, %c0_148, %c0_149] : memref<5x64x128xbf16, #tpu.memory_space<vmem>>, vector<1x64x128xbf16>
    %158 = vector.shape_cast %157 : vector<1x64x128xbf16> to vector<64x128xbf16>
    %cst_150 = arith.constant dense<0.000000e+00> : vector<32x128xf32>
    %159 = tpu.matmul %156, %158, %cst_150 {dimension_numbers = #tpu.dot_dimension_numbers<[1], [0], [0], [1], [0, 0, 1, 1], [], []>} : vector<32x64xbf16>, vector<64x128xbf16>, vector<32x128xf32> -> vector<32x128xf32>
    %160 = arith.addf %153, %159 : vector<32x128xf32>
    %c0_151 = arith.constant 0 : index
    %c2_152 = arith.constant 2 : index
    %c0_153 = arith.constant 0 : index
    %161 = tpu.strided_load %arg13[%c0_151, %c2_152, %c0_153] {strides = array<i32: 1, 2, 1>} : memref<2x36x64xf32, #tpu.memory_space<vmem>>, vector<2x16x64xf32>
    %162 = vector.shape_cast %161 : vector<2x16x64xf32> to vector<32x64xf32>
    %163 = arith.truncf %162 : vector<32x64xf32> to vector<32x64xbf16>
    %c2_154 = arith.constant 2 : index
    %c0_155 = arith.constant 0 : index
    %c0_156 = arith.constant 0 : index
    %164 = vector.load %arg8[%c2_154, %c0_155, %c0_156] : memref<5x64x128xbf16, #tpu.memory_space<vmem>>, vector<1x64x128xbf16>
    %165 = vector.shape_cast %164 : vector<1x64x128xbf16> to vector<64x128xbf16>
    %cst_157 = arith.constant dense<0.000000e+00> : vector<32x128xf32>
    %166 = tpu.matmul %163, %165, %cst_157 {dimension_numbers = #tpu.dot_dimension_numbers<[1], [0], [0], [1], [0, 0, 1, 1], [], []>} : vector<32x64xbf16>, vector<64x128xbf16>, vector<32x128xf32> -> vector<32x128xf32>
    %167 = arith.addf %160, %166 : vector<32x128xf32>
    %c0_158 = arith.constant 0 : index
    %c3_159 = arith.constant 3 : index
    %c0_160 = arith.constant 0 : index
    %168 = tpu.strided_load %arg13[%c0_158, %c3_159, %c0_160] {strides = array<i32: 1, 2, 1>} : memref<2x36x64xf32, #tpu.memory_space<vmem>>, vector<2x16x64xf32>
    %169 = vector.shape_cast %168 : vector<2x16x64xf32> to vector<32x64xf32>
    %170 = arith.truncf %169 : vector<32x64xf32> to vector<32x64xbf16>
    %c3_161 = arith.constant 3 : index
    %c0_162 = arith.constant 0 : index
    %c0_163 = arith.constant 0 : index
    %171 = vector.load %arg8[%c3_161, %c0_162, %c0_163] : memref<5x64x128xbf16, #tpu.memory_space<vmem>>, vector<1x64x128xbf16>
    %172 = vector.shape_cast %171 : vector<1x64x128xbf16> to vector<64x128xbf16>
    %cst_164 = arith.constant dense<0.000000e+00> : vector<32x128xf32>
    %173 = tpu.matmul %170, %172, %cst_164 {dimension_numbers = #tpu.dot_dimension_numbers<[1], [0], [0], [1], [0, 0, 1, 1], [], []>} : vector<32x64xbf16>, vector<64x128xbf16>, vector<32x128xf32> -> vector<32x128xf32>
    %174 = arith.addf %167, %173 : vector<32x128xf32>
    %c0_165 = arith.constant 0 : index
    %c4_166 = arith.constant 4 : index
    %c0_167 = arith.constant 0 : index
    %175 = tpu.strided_load %arg13[%c0_165, %c4_166, %c0_167] {strides = array<i32: 1, 2, 1>} : memref<2x36x64xf32, #tpu.memory_space<vmem>>, vector<2x16x64xf32>
    %176 = vector.shape_cast %175 : vector<2x16x64xf32> to vector<32x64xf32>
    %177 = arith.truncf %176 : vector<32x64xf32> to vector<32x64xbf16>
    %c4_168 = arith.constant 4 : index
    %c0_169 = arith.constant 0 : index
    %c0_170 = arith.constant 0 : index
    %178 = vector.load %arg8[%c4_168, %c0_169, %c0_170] : memref<5x64x128xbf16, #tpu.memory_space<vmem>>, vector<1x64x128xbf16>
    %179 = vector.shape_cast %178 : vector<1x64x128xbf16> to vector<64x128xbf16>
    %cst_171 = arith.constant dense<0.000000e+00> : vector<32x128xf32>
    %180 = tpu.matmul %177, %179, %cst_171 {dimension_numbers = #tpu.dot_dimension_numbers<[1], [0], [0], [1], [0, 0, 1, 1], [], []>} : vector<32x64xbf16>, vector<64x128xbf16>, vector<32x128xf32> -> vector<32x128xf32>
    %181 = arith.addf %174, %180 : vector<32x128xf32>
    %c0_172 = arith.constant 0 : index
    %c0_173 = arith.constant 0 : index
    %182 = vector.load %arg9[%c0_172, %c0_173] : memref<1x128xf32, #tpu.memory_space<vmem>>, vector<1x128xf32>
    %183 = vector.broadcast %182 : vector<1x128xf32> to vector<32x128xf32>
    %184 = arith.addf %181, %183 : vector<32x128xf32>
    %cst_174 = arith.constant 0.000000e+00 : f32
    %185 = vector.broadcast %cst_174 : f32 to vector<32x128xf32>
    %186 = arith.maximumf %184, %185 : vector<32x128xf32>
    %187 = vector.shape_cast %186 : vector<32x128xf32> to vector<2x16x128xf32>
    %c0_175 = arith.constant 0 : index
    %c0_176 = arith.constant 0 : index
    %c0_177 = arith.constant 0 : index
    %188 = vector.load %arg10[%c0_175, %c0_176, %c0_177] : memref<2x16x128xf32, #tpu.memory_space<vmem>>, vector<2x16x128xf32>
    tpu.vector_store %arg10[%c0_175, %c0_176, %c0_177], %187 {strides = array<i32>} : memref<2x16x128xf32, #tpu.memory_space<vmem>>, vector<2x16x128xf32>,
    return
  }
  func.func @transform_0(%arg0: i32) -> (i32, i32, i32) {
    %c0_i32 = arith.constant 0 : i32
    %c0_i32_0 = arith.constant 0 : i32
    %c0_i32_1 = arith.constant 0 : i32
    return %arg0, %c0_i32, %c0_i32_0 : i32, i32, i32
  }
  func.func @transform_1(%arg0: i32) -> (i32, i32, i32) {
    %c0_i32 = arith.constant 0 : i32
    %c0_i32_0 = arith.constant 0 : i32
    %c0_i32_1 = arith.constant 0 : i32
    %c0_i32_2 = arith.constant 0 : i32
    return %c0_i32, %c0_i32_0, %c0_i32_1 : i32, i32, i32
  }
  func.func @transform_2(%arg0: i32) -> (i32, i32) {
    %c0_i32 = arith.constant 0 : i32
    %c0_i32_0 = arith.constant 0 : i32
    %c0_i32_1 = arith.constant 0 : i32
    return %c0_i32, %c0_i32_0 : i32, i32
  }
  func.func @transform_3(%arg0: i32) -> (i32, i32, i32) {
    %c0_i32 = arith.constant 0 : i32
    %c0_i32_0 = arith.constant 0 : i32
    %c0_i32_1 = arith.constant 0 : i32
    %c0_i32_2 = arith.constant 0 : i32
    return %c0_i32, %c0_i32_0, %c0_i32_1 : i32, i32, i32
  }
  func.func @transform_4(%arg0: i32) -> (i32, i32) {
    %c0_i32 = arith.constant 0 : i32
    %c0_i32_0 = arith.constant 0 : i32
    %c0_i32_1 = arith.constant 0 : i32
    return %c0_i32, %c0_i32_0 : i32, i32
  }
  func.func @transform_5(%arg0: i32) -> (i32, i32, i32) {
    %c0_i32 = arith.constant 0 : i32
    %c0_i32_0 = arith.constant 0 : i32
    %c0_i32_1 = arith.constant 0 : i32
    %c0_i32_2 = arith.constant 0 : i32
    return %c0_i32, %c0_i32_0, %c0_i32_1 : i32, i32, i32
  }
  func.func @transform_6(%arg0: i32) -> (i32, i32) {
    %c0_i32 = arith.constant 0 : i32
    %c0_i32_0 = arith.constant 0 : i32
    %c0_i32_1 = arith.constant 0 : i32
    return %c0_i32, %c0_i32_0 : i32, i32
  }
  func.func @transform_7(%arg0: i32) -> (i32, i32, i32) {
    %c0_i32 = arith.constant 0 : i32
    %c0_i32_0 = arith.constant 0 : i32
    %c0_i32_1 = arith.constant 0 : i32
    %c0_i32_2 = arith.constant 0 : i32
    return %c0_i32, %c0_i32_0, %c0_i32_1 : i32, i32, i32
  }
  func.func @transform_8(%arg0: i32) -> (i32, i32) {
    %c0_i32 = arith.constant 0 : i32
    %c0_i32_0 = arith.constant 0 : i32
    %c0_i32_1 = arith.constant 0 : i32
    return %c0_i32, %c0_i32_0 : i32, i32
  }
  func.func @transform_9(%arg0: i32) -> (i32, i32, i32) {
    %c0_i32 = arith.constant 0 : i32
    %c0_i32_0 = arith.constant 0 : i32
    %c0_i32_1 = arith.constant 0 : i32
    return %arg0, %c0_i32, %c0_i32_0 : i32, i32, i32
  }
}

</mosaic_0001>

<bundles_post_ra>
// kernel: encoder_forward.1
= control target key start
LH: loop header
LB: loop body
LE: loop exit
PB: predicated region body
PF: predicated region fallthrough
CT: control target
= control target key end

     0   :  { %v4574_v2 = vmov 0   ;;  %s5759_s0 = inlined_call_operand.vmem [shape: f32[2,260,1], index: 0, kind: input, shape index: {}]   ;;  %s5760_s1 = inlined_call_operand.vmem [shape: f32[5,1,16], index: 1, kind: input, shape index: {}]   ;;  %s5761_s2 = inlined_call_operand.vmem [shape: f32[1,16], index: 2, kind: input, shape index: {}]   ;;  %s5762_s3 = inlined_call_operand.vmem [shape: bf16[5,16,32], index: 3, kind: input, shape index: {}]   ;;  %s5763_s4 = inlined_call_operand.vmem [shape: f32[1,32], index: 4, kind: input, shape index: {}]   ;;  %s5764_s5 = inlined_call_operand.vmem [shape: bf16[5,32,64], index: 5, kind: input, shape index: {}]   ;;  %s5765_s6 = inlined_call_operand.vmem [shape: f32[1,64], index: 6, kind: input, shape index: {}]   ;;  %s5766_s7 = inlined_call_operand.vmem [shape: bf16[5,64,128], index: 7, kind: input, shape index: {}]   ;;  %s5767_s8 = inlined_call_operand.vmem [shape: f32[1,128], index: 8, kind: input, shape index: {}]   ;;  %s5768_s9 = inlined_call_operand.hbm [shape: f32[2,16,128], index: 9, kind: output, shape index: {}]  }
   0x1   :  { %v3743_v0 = vld [vmem:[%s5759_s0 + $0x20] ss:$2 sm:$0xff]  ;;  %4508 = vset.pattern.permute.xlu1 %v4574_v2  ;;  %4507 = vset.pattern.permute.xlu0 %v4574_v2  ;;  %v3744_v3 = vld [vmem:[%s5759_s0 + $0x30] ss:$2 sm:$0xff]  ;;  %v3775_v5 = vld [vmem:[%s5759_s0 + $0x11] ss:$2 sm:$0xff] }
   0x2   :  { %v49_v1 = vld [vmem:[%s5759_s0] ss:$2 sm:$0xff]  ;;  %125 = vperm.xlu1 %4508, %v3743_v0   ;;  %v3742_v4 = vld [vmem:[%s5759_s0 + $0x10] ss:$2 sm:$0xff]  ;;  %v3774_v6 = vld [vmem:[%s5759_s0 + $0x1] ss:$2 sm:$0xff] }
   0x3   :  { %115 = vperm.xlu0 %4507, %v49_v1   ;;  %v3777_v7 = vld [vmem:[%s5759_s0 + $0x31] ss:$2 sm:$0xff]  ;;  %v3776_v8 = vld [vmem:[%s5759_s0 + $0x21] ss:$2 sm:$0xff]  ;;  %v3746_v9 = vld [vmem:[%s5759_s0 + $0x50] ss:$2 sm:$0xff] }
   0x4   :  { %v3745_v10 = vld [vmem:[%s5759_s0 + $0x40] ss:$2 sm:$0xff]  ;;  %v3748_v11 = vld [vmem:[%s5759_s0 + $0x70] ss:$2 sm:$0xff]  ;;  %v3779_v13 = vld [vmem:[%s5759_s0 + $0x51] ss:$2 sm:$0xff] }
   0x5   :  { %v3747_v12 = vld [vmem:[%s5759_s0 + $0x60] ss:$2 sm:$0xff]  ;;  %v3778_v14 = vld [vmem:[%s5759_s0 + $0x41] ss:$2 sm:$0xff]  ;;  %v3781_v15 = vld [vmem:[%s5759_s0 + $0x71] ss:$2 sm:$0xff] }
   0x6   :  { %130 = vperm.xlu1 %4508, %v3744_v3   ;;  %v3780_v16 = vld [vmem:[%s5759_s0 + $0x61] ss:$2 sm:$0xff]  ;;  %v3809_v17 = vld [vmem:[%s5759_s0 + $0x12] ss:$2 sm:$0xff]  ;;  %v3808_v18 = vld [vmem:[%s5759_s0 + $0x2] ss:$2 sm:$0xff] }
   0x7   :  { %120 = vperm.xlu0 %4507, %v3742_v4   ;;  %v3811_v19 = vld [vmem:[%s5759_s0 + $0x32] ss:$2 sm:$0xff]  ;;  %v3810_v20 = vld [vmem:[%s5759_s0 + $0x22] ss:$2 sm:$0xff]  ;;  %v3843_v25 = vld [vmem:[%s5759_s0 + $0x13] ss:$2 sm:$0xff] }
   0x8   :  { %v3813_v21 = vld [vmem:[%s5759_s0 + $0x52] ss:$2 sm:$0xff]  ;;  %v3812_v22 = vld [vmem:[%s5759_s0 + $0x42] ss:$2 sm:$0xff]  ;;  %v3842_v26 = vld [vmem:[%s5759_s0 + $0x3] ss:$2 sm:$0xff] }
   0x9   :  { %v3815_v23 = vld [vmem:[%s5759_s0 + $0x72] ss:$2 sm:$0xff]  ;;  %v3814_v24 = vld [vmem:[%s5759_s0 + $0x62] ss:$2 sm:$0xff]  ;;  %v3845_v27 = vld [vmem:[%s5759_s0 + $0x33] ss:$2 sm:$0xff] }
   0xa   :  { %416 = vperm.xlu1 %4508, %v3775_v5   ;;  %v3844_v28 = vld [vmem:[%s5759_s0 + $0x23] ss:$2 sm:$0xff]  ;;  %v3847_v29 = vld [vmem:[%s5759_s0 + $0x53] ss:$2 sm:$0xff] }
   0xb   :  { %411 = vperm.xlu0 %4507, %v3774_v6   ;;  %v3846_v30 = vld [vmem:[%s5759_s0 + $0x43] ss:$2 sm:$0xff] }
   0xe   :  { %426 = vperm.xlu1 %4508, %v3777_v7  }
   0xf   :  { %421 = vperm.xlu0 %4507, %v3776_v8  }
  0x12   :  { %140 = vperm.xlu1 %4508, %v3746_v9  }
  0x13   :  { %135 = vperm.xlu0 %4507, %v3745_v10  }
  0x16   :  { %150 = vperm.xlu1 %4508, %v3748_v11  }
  0x17   :  { %145 = vperm.xlu0 %4507, %v3747_v12  }
  0x1a   :  { %436 = vperm.xlu1 %4508, %v3779_v13  }
  0x1b   :  { %431 = vperm.xlu0 %4507, %v3778_v14  }
  0x1e   :  { %446 = vperm.xlu1 %4508, %v3781_v15  }
  0x1f   :  { %441 = vperm.xlu0 %4507, %v3780_v16  }
  0x22   :  { %712 = vperm.xlu1 %4508, %v3809_v17  }
  0x23   :  { %707 = vperm.xlu0 %4507, %v3808_v18  }
  0x26   :  { %722 = vperm.xlu1 %4508, %v3811_v19  }
  0x27   :  { %717 = vperm.xlu0 %4507, %v3810_v20  }
  0x2a   :  { %732 = vperm.xlu1 %4508, %v3813_v21  }
  0x2b   :  { %727 = vperm.xlu0 %4507, %v3812_v22  }
  0x2e   :  { %742 = vperm.xlu1 %4508, %v3815_v23  }
  0x2f   :  { %737 = vperm.xlu0 %4507, %v3814_v24  }
  0x32   :  { %1008 = vperm.xlu1 %4508, %v3843_v25  }
  0x33   :  { %1003 = vperm.xlu0 %4507, %v3842_v26  }
  0x36   :  { %1018 = vperm.xlu1 %4508, %v3845_v27  }
  0x37   :  { %1013 = vperm.xlu0 %4507, %v3844_v28  }
  0x38   :  { %14 = vsyncpa [#allocation6], 0  ;;  %v3849_v31 = vld [vmem:[%s5759_s0 + $0x73] ss:$2 sm:$0xff]  ;;  %v3848_v32 = vld [vmem:[%s5759_s0 + $0x63] ss:$2 sm:$0xff] }
  0x39   :  { %v3877_v33 = vld [vmem:[%s5759_s0 + $0x14] ss:$2 sm:$0xff]  ;;  %v3876_v34 = vld [vmem:[%s5759_s0 + $0x4] ss:$2 sm:$0xff]  ;;  %vm34_vm0 = vcmask 123904   ;;  %v4575_v41 = vmov 0.0  }
  0x3a   :  { %1028 = vperm.xlu1 %4508, %v3847_v29   ;;  %v3879_v35 = vld [vmem:[%s5759_s0 + $0x34] ss:$2 sm:$0xff]  ;;  %v3878_v36 = vld [vmem:[%s5759_s0 + $0x24] ss:$2 sm:$0xff]  ;;  %35 = vst.msk [vmem:[#allocation2] sm:$0x3] %vm34_vm0, %v4575_v41 }
  0x3b   :  { %1023 = vperm.xlu0 %4507, %v3846_v30   ;;  %v3881_v37 = vld [vmem:[%s5759_s0 + $0x54] ss:$2 sm:$0xff]  ;;  %v3880_v38 = vld [vmem:[%s5759_s0 + $0x44] ss:$2 sm:$0xff]  ;;  %36 = vst.msk [vmem:[#allocation2 + $0x88] sm:$0x3] %vm34_vm0, %v4575_v41 }
  0x3c   :  { %v3883_v39 = vld [vmem:[%s5759_s0 + $0x74] ss:$2 sm:$0xff]  ;;  %v3882_v40 = vld [vmem:[%s5759_s0 + $0x64] ss:$2 sm:$0xff]  ;;  %37 = vst.msk [vmem:[#allocation2 + $0x82] sm:$0x3] %vm34_vm0, %v4575_v41 }
  0x3d   :  { %38 = vst.msk [vmem:[#allocation2 + $0x10a] sm:$0x3] %vm34_vm0, %v4575_v41  ;;  %v3750_v42 = vld [vmem:[%s5759_s0 + $0x90] ss:$2 sm:$0xff]  ;;  %v3749_v43 = vld [vmem:[%s5759_s0 + $0x80] ss:$2 sm:$0xff] }
  0x3e   :  { %1038 = vperm.xlu1 %4508, %v3849_v31   ;;  %v3752_v44 = vld [vmem:[%s5759_s0 + $0xb0] ss:$2 sm:$0xff]  ;;  %v3751_v45 = vld [vmem:[%s5759_s0 + $0xa0] ss:$2 sm:$0xff]  ;;  %v3783_v46 = vld [vmem:[%s5759_s0 + $0x91] ss:$2 sm:$0xff] }
  0x3f   :  { %1033 = vperm.xlu0 %4507, %v3848_v32   ;;  %v3782_v47 = vld [vmem:[%s5759_s0 + $0x81] ss:$2 sm:$0xff]  ;;  %v3785_v48 = vld [vmem:[%s5759_s0 + $0xb1] ss:$2 sm:$0xff]  ;;  %v3754_v51 = vld [vmem:[%s5759_s0 + $0xd0] ss:$2 sm:$0xff] }
  0x40   :  { %v3784_v49 = vld [vmem:[%s5759_s0 + $0xa1] ss:$2 sm:$0xff]  ;;  %v3753_v52 = vld [vmem:[%s5759_s0 + $0xc0] ss:$2 sm:$0xff]  ;;  %v3756_v53 = vld [vmem:[%s5759_s0 + $0xf0] ss:$2 sm:$0xff] }
  0x41   :  { %v4509_v50 = vld [vmem:[%s5762_s3 + $0x8] sm:$0xff]   ;;  %v3787_v55 = vld [vmem:[%s5759_s0 + $0xd1] ss:$2 sm:$0xff]  ;;  %v3817_v59 = vld [vmem:[%s5759_s0 + $0x92] ss:$2 sm:$0xff]  ;;  %vm1598_vm1 = vcmask 130048  }
  0x42   :  { %1304 = vperm.xlu1 %4508, %v3877_v33   ;;  %4180 = vmatprep.subr.bf16.mxu0 %v4509_v50  ;;  %v3755_v54 = vld [vmem:[%s5759_s0 + $0xe0] ss:$2 sm:$0xff]  ;;  %v3786_v56 = vld [vmem:[%s5759_s0 + $0xc1] ss:$2 sm:$0xff]  ;;  %v3789_v57 = vld [vmem:[%s5759_s0 + $0xf1] ss:$2 sm:$0xff] }
  0x43   :  { %1299 = vperm.xlu0 %4507, %v3876_v34   ;;  %4181 = vmatpush3.bf16.msra.mxu0 %v4509_v50  ;;  %v3788_v58 = vld [vmem:[%s5759_s0 + $0xe1] ss:$2 sm:$0xff]  ;;  %v3816_v60 = vld [vmem:[%s5759_s0 + $0x82] ss:$2 sm:$0xff]  ;;  %v3819_v61 = vld [vmem:[%s5759_s0 + $0xb2] ss:$2 sm:$0xff] }
  0x44   :  { %v3818_v62 = vld [vmem:[%s5759_s0 + $0xa2] ss:$2 sm:$0xff]  ;;  %v3821_v63 = vld [vmem:[%s5759_s0 + $0xd2] ss:$2 sm:$0xff]  ;;  %v3851_v3 = vld [vmem:[%s5759_s0 + $0x93] ss:$2 sm:$0xff] }
  0x45   :  { %v3820_v0 = vld [vmem:[%s5759_s0 + $0xc2] ss:$2 sm:$0xff]  ;;  %v3823_v1 = vld [vmem:[%s5759_s0 + $0xf2] ss:$2 sm:$0xff]  ;;  %v3850_v4 = vld [vmem:[%s5759_s0 + $0x83] ss:$2 sm:$0xff] }
  0x46   :  { %1314 = vperm.xlu1 %4508, %v3879_v35   ;;  %v3822_v2 = vld [vmem:[%s5759_s0 + $0xe2] ss:$2 sm:$0xff]  ;;  %v3853_v7 = vld [vmem:[%s5759_s0 + $0xb3] ss:$2 sm:$0xff]  ;;  %v3852_v8 = vld [vmem:[%s5759_s0 + $0xa3] ss:$2 sm:$0xff] }
  0x47   :  { %1309 = vperm.xlu0 %4507, %v3878_v36   ;;  %v3855_v11 = vld [vmem:[%s5759_s0 + $0xd3] ss:$2 sm:$0xff]  ;;  %v3854_v12 = vld [vmem:[%s5759_s0 + $0xc3] ss:$2 sm:$0xff]  ;;  %v3885_v19 = vld [vmem:[%s5759_s0 + $0x94] ss:$2 sm:$0xff] }
  0x48   :  { %v3857_v15 = vld [vmem:[%s5759_s0 + $0xf3] ss:$2 sm:$0xff]  ;;  %v3856_v16 = vld [vmem:[%s5759_s0 + $0xe3] ss:$2 sm:$0xff]  ;;  %v3884_v20 = vld [vmem:[%s5759_s0 + $0x84] ss:$2 sm:$0xff] }
  0x49   :  { %v3887_v23 = vld [vmem:[%s5759_s0 + $0xb4] ss:$2 sm:$0xff]  ;;  %v3886_v24 = vld [vmem:[%s5759_s0 + $0xa4] ss:$2 sm:$0xff]  ;;  %vm39_vm2 = vcmask 254976   ;;  %vm2566_vm3 = vcmask 261120  }
  0x4a   :  { %1324 = vperm.xlu1 %4508, %v3881_v37   ;;  %v3889_v27 = vld [vmem:[%s5759_s0 + $0xd4] ss:$2 sm:$0xff]  ;;  %v3888_v28 = vld [vmem:[%s5759_s0 + $0xc4] ss:$2 sm:$0xff]  ;;  %40 = vst.msk [vmem:[#allocation3] sm:$0x3] %vm39_vm2, %v4575_v41 }
  0x4b   :  { %1319 = vperm.xlu0 %4507, %v3880_v38   ;;  %v3891_v31 = vld [vmem:[%s5759_s0 + $0xf4] ss:$2 sm:$0xff]  ;;  %v3890_v32 = vld [vmem:[%s5759_s0 + $0xe4] ss:$2 sm:$0xff]  ;;  %42 = vst.msk [vmem:[#allocation3 + $0x42] sm:$0x3] %vm39_vm2, %v4575_v41 }
  0x4c   :  { %v3758_v35 = vld [vmem:[%s5759_s0 + $0x118] ss:$2 sm:$0xff]  ;;  %v3757_v36 = vld [vmem:[%s5759_s0 + $0x108] ss:$2 sm:$0xff]  ;;  %41 = vst.msk [vmem:[#allocation3 + $0x48] sm:$0x3] %vm39_vm2, %v4575_v41 }
  0x4d   :  { %43 = vst.msk [vmem:[#allocation3 + $0x8a] sm:$0x3] %vm39_vm2, %v4575_v41  ;;  %vm44_vm4 = vcmask 517120   ;;  %vm3198_vm5 = vcmask 523264  }
  0x4e   :  { %1334 = vperm.xlu1 %4508, %v3883_v39   ;;  %v3760_v39 = vld [vmem:[%s5759_s0 + $0x138] ss:$2 sm:$0xff]  ;;  %45 = vst.msk [vmem:[#allocation4] sm:$0x3] %vm44_vm4, %v4575_v41  ;;  %46 = vst.msk [vmem:[#allocation4 + $0x28] sm:$0x3] %vm44_vm4, %v4575_v41 }
  0x4f   :  { %1329 = vperm.xlu0 %4507, %v3882_v40   ;;  %v3759_v40 = vld [vmem:[%s5759_s0 + $0x128] ss:$2 sm:$0xff]  ;;  %47 = vst.msk [vmem:[#allocation4 + $0x22] sm:$0x3] %vm44_vm4, %v4575_v41  ;;  %48 = vst.msk [vmem:[#allocation4 + $0x4a] sm:$0x3] %vm44_vm4, %v4575_v41 }
  0x50   :  { %v4528_v41 = vld [vmem:[%s5766_s7] sm:$0xff]  }
  0x52   :  { %160 = vperm.xlu1 %4508, %v3750_v42  }
  0x53   :  { %155 = vperm.xlu0 %4507, %v3749_v43  }
  0x56   :  { %170 = vperm.xlu1 %4508, %v3752_v44   ;;  %v3791_v44 = vld [vmem:[%s5759_s0 + $0x119] ss:$2 sm:$0xff] }
  0x57   :  { %165 = vperm.xlu0 %4507, %v3751_v45   ;;  %v3790_v45 = vld [vmem:[%s5759_s0 + $0x109] ss:$2 sm:$0xff] }
  0x5a   :  { %456 = vperm.xlu1 %4508, %v3783_v46  }
  0x5b   :  { %451 = vperm.xlu0 %4507, %v3782_v47  }
  0x5e   :  { %466 = vperm.xlu1 %4508, %v3785_v48   ;;  %v3793_v48 = vld [vmem:[%s5759_s0 + $0x139] ss:$2 sm:$0xff] }
  0x5f   :  { %461 = vperm.xlu0 %4507, %v3784_v49   ;;  %v3792_v49 = vld [vmem:[%s5759_s0 + $0x129] ss:$2 sm:$0xff] }
  0x62   :  { %180 = vperm.xlu1 %4508, %v3754_v51  }
  0x63   :  { %175 = vperm.xlu0 %4507, %v3753_v52   ;;  %v3762_v52 = vld [vmem:[%s5759_s0 + $0x158] ss:$2 sm:$0xff] }
  0x66   :  { %190 = vperm.xlu1 %4508, %v3756_v53   ;;  %v3761_v53 = vld [vmem:[%s5759_s0 + $0x148] ss:$2 sm:$0xff] }
  0x67   :  { %185 = vperm.xlu0 %4507, %v3755_v54  }
  0x6a   :  { %476 = vperm.xlu1 %4508, %v3787_v55  }
  0x6b   :  { %471 = vperm.xlu0 %4507, %v3786_v56   ;;  %v3764_v56 = vld [vmem:[%s5759_s0 + $0x178] ss:$2 sm:$0xff] }
  0x6e   :  { %486 = vperm.xlu1 %4508, %v3789_v57   ;;  %v3763_v57 = vld [vmem:[%s5759_s0 + $0x168] ss:$2 sm:$0xff] }
  0x6f   :  { %481 = vperm.xlu0 %4507, %v3788_v58   ;;  %v4959_v58 = vld [vmem:[%s5760_s1 + $0x1] ss:$0 sm:$0xff] }
  0x72   :  { %752 = vperm.xlu1 %4508, %v3817_v59  }
  0x73   :  { %747 = vperm.xlu0 %4507, %v3816_v60  }
  0x76   :  { %762 = vperm.xlu1 %4508, %v3819_v61   ;;  %v4964_v61 = vld [vmem:[%s5760_s1] ss:$0 sm:$0xff] }
  0x77   :  { %757 = vperm.xlu0 %4507, %v3818_v62  }
  0x7a   :  { %772 = vperm.xlu1 %4508, %v3821_v63   ;;  %v3795_v63 = vld [vmem:[%s5759_s0 + $0x159] ss:$2 sm:$0xff] }
  0x7b   :  { %767 = vperm.xlu0 %4507, %v3820_v0   ;;  %v3794_v0 = vld [vmem:[%s5759_s0 + $0x149] ss:$2 sm:$0xff] }
  0x7e   :  { %782 = vperm.xlu1 %4508, %v3823_v1  }
  0x7f   :  { %777 = vperm.xlu0 %4507, %v3822_v2  }
  0x81   :  { %v4834_v5 = vpop.permute.xlu1 %125 }
  0x82   :  { %v4836_v6 = vpop.permute.xlu0 %115  ;;  %1048 = vperm.xlu1 %4508, %v3851_v3   ;;  %v4981_v3 = vld [vmem:[%s5760_s1 + $0x2] ss:$0 sm:$0xff] }
  0x83   :  { %1043 = vperm.xlu0 %4507, %v3850_v4  }
  0x85   :  { %v4844_v9 = vpop.permute.xlu1 %130 }
  0x86   :  { %v4846_v10 = vpop.permute.xlu0 %120  ;;  %1058 = vperm.xlu1 %4508, %v3853_v7  }
  0x87   :  { %1053 = vperm.xlu0 %4507, %v3852_v8   ;;  %v280_v4 = vmul.f32 %v4964_v61, %v4846_v10  ;;  %v281_v10 = vmul.f32 %v4964_v61, %v4834_v5 }
  0x89   :  { %v4854_v13 = vpop.permute.xlu1 %416 }
  0x8a   :  { %v4856_v14 = vpop.permute.xlu0 %411  ;;  %1068 = vperm.xlu1 %4508, %v3855_v11   ;;  %v576_v62 = vmul.f32 %v4959_v58, %v4854_v13  ;;  %v282_v13 = vmul.f32 %v4964_v61, %v4844_v9  ;;  %v3796_v9 = vld [vmem:[%s5759_s0 + $0x169] ss:$2 sm:$0xff] }
  0x8b   :  { %1063 = vperm.xlu0 %4507, %v3854_v12   ;;  %v575_v1 = vmul.f32 %v4959_v58, %v4856_v14  ;;  %v279_v12 = vmul.f32 %v4964_v61, %v4836_v6  ;;  %v4998_v14 = vld [vmem:[%s5760_s1 + $0x3] ss:$0 sm:$0xff] }
  0x8c   :  { %v3797_v6 = vld [vmem:[%s5759_s0 + $0x179] ss:$2 sm:$0xff] }
  0x8d   :  { %v4864_v17 = vpop.permute.xlu1 %426 }
  0x8e   :  { %v4866_v18 = vpop.permute.xlu0 %421  ;;  %1078 = vperm.xlu1 %4508, %v3857_v15   ;;  %v578_v2 = vmul.f32 %v4959_v58, %v4864_v17  ;;  %v608_v15 = vadd.f32 %v576_v62, %v280_v4  ;;  %v607_v17 = vadd.f32 %v575_v1, %v279_v12 }
  0x8f   :  { %1073 = vperm.xlu0 %4507, %v3856_v16   ;;  %v577_v7 = vmul.f32 %v4959_v58, %v4866_v18 }
  0x90   :  { %v610_v18 = vadd.f32 %v578_v2, %v282_v13 }
  0x91   :  { %v4874_v21 = vpop.permute.xlu1 %140 }
  0x92   :  { %v4876_v22 = vpop.permute.xlu0 %135  ;;  %1344 = vperm.xlu1 %4508, %v3885_v19   ;;  %v284_v5 = vmul.f32 %v4964_v61, %v4874_v21 }
  0x93   :  { %1339 = vperm.xlu0 %4507, %v3884_v20  }
  0x95   :  { %v4884_v25 = vpop.permute.xlu1 %150 }
  0x96   :  { %v4886_v26 = vpop.permute.xlu0 %145  ;;  %1354 = vperm.xlu1 %4508, %v3887_v23   ;;  %v609_v23 = vadd.f32 %v577_v7, %v281_v10 }
  0x97   :  { %1349 = vperm.xlu0 %4507, %v3886_v24   ;;  %v285_v21 = vmul.f32 %v4964_v61, %v4886_v26  ;;  %v3824_v26 = vld [vmem:[%s5759_s0 + $0x10a] ss:$2 sm:$0xff] }
  0x99   :  { %v4894_v29 = vpop.permute.xlu1 %436 }
  0x9a   :  { %v4896_v30 = vpop.permute.xlu0 %431  ;;  %1364 = vperm.xlu1 %4508, %v3889_v27   ;;  %v580_v19 = vmul.f32 %v4959_v58, %v4894_v29  ;;  %v286_v29 = vmul.f32 %v4964_v61, %v4884_v25  ;;  %v3825_v25 = vld [vmem:[%s5759_s0 + $0x11a] ss:$2 sm:$0xff] }
  0x9b   :  { %1359 = vperm.xlu0 %4507, %v3888_v28   ;;  %v579_v24 = vmul.f32 %v4959_v58, %v4896_v30 }
  0x9d   :  { %v4904_v33 = vpop.permute.xlu1 %446 }
  0x9e   :  { %v4906_v34 = vpop.permute.xlu0 %441  ;;  %1374 = vperm.xlu1 %4508, %v3891_v31  }
  0x9f   :  { %1369 = vperm.xlu0 %4507, %v3890_v32   ;;  %v283_v32 = vmul.f32 %v4964_v61, %v4876_v22  ;;  %v5035_v22 = vld [vmem:[%s5760_s1 + $0x4] ss:$0 sm:$0xff] }
  0xa1   :  { %v713_v37 = vpop.permute.xlu1 %712 }
  0xa2   :  { %v708_v38 = vpop.permute.xlu0 %707  ;;  %200 = vperm.xlu1 %4508, %v3758_v35   ;;  %v872_v16 = vmul.f32 %v4981_v3, %v713_v37 }
  0xa3   :  { %195 = vperm.xlu0 %4507, %v3757_v36   ;;  %v871_v20 = vmul.f32 %v4981_v3, %v708_v38  ;;  %v612_v38 = vadd.f32 %v580_v19, %v284_v5 }
  0xa4   :  { %v904_v30 = vadd.f32 %v872_v16, %v608_v15 }
  0xa5   :  { %v4920_v42 = vpop.permute.xlu1 %722 }
  0xa6   :  { %v4922_v43 = vpop.permute.xlu0 %717  ;;  %210 = vperm.xlu1 %4508, %v3760_v39   ;;  %v874_v36 = vmul.f32 %v4981_v3, %v4920_v42  ;;  %v582_v39 = vmul.f32 %v4959_v58, %v4904_v33  ;;  %v903_v42 = vadd.f32 %v871_v20, %v607_v17 }
  0xa7   :  { %205 = vperm.xlu0 %4507, %v3759_v40   ;;  %v873_v37 = vmul.f32 %v4981_v3, %v4922_v43  ;;  %v581_v40 = vmul.f32 %v4959_v58, %v4906_v34  ;;  %v611_v43 = vadd.f32 %v579_v24, %v283_v32  ;;  %v3828_v24 = vld [vmem:[%s5759_s0 + $0x14a] ss:$2 sm:$0xff] }
  0xa8   :  { %v906_v33 = vadd.f32 %v874_v36, %v610_v18  ;;  %v614_v62 = vadd.f32 %v582_v39, %v286_v29 }
  0xa9   :  { %v4930_v46 = vpop.permute.xlu1 %732 }
  0xaa   :  { %v4932_v47 = vpop.permute.xlu0 %727  ;;  %496 = vperm.xlu1 %4508, %v3791_v44   ;;  %v876_v34 = vmul.f32 %v4981_v3, %v4930_v46  ;;  %v3826_v46 = vld [vmem:[%s5759_s0 + $0x12a] ss:$2 sm:$0xff] }
  0xab   :  { %491 = vperm.xlu0 %4507, %v3790_v45  }
  0xad   :  { %v4940_v50 = vpop.permute.xlu1 %742 }
  0xae   :  { %v4942_v51 = vpop.permute.xlu0 %737  ;;  %506 = vperm.xlu1 %4508, %v3793_v48   ;;  %v878_v18 = vmul.f32 %v4981_v3, %v4940_v50 }
  0xaf   :  { %501 = vperm.xlu0 %4507, %v3792_v49  }
  0xb1   :  { %v1009_v54 = vpop.permute.xlu1 %1008 }
  0xb2   :  { %v1004_v55 = vpop.permute.xlu0 %1003  ;;  %220 = vperm.xlu1 %4508, %v3762_v52   ;;  %v1168_v27 = vmul.f32 %v4998_v14, %v1009_v54 }
  0xb3   :  { %215 = vperm.xlu0 %4507, %v3761_v53   ;;  %v1167_v35 = vmul.f32 %v4998_v14, %v1004_v55 }
  0xb4   :  { %v1200_v44 = vadd.f32 %v1168_v27, %v904_v30 }
  0xb5   :  { %v1019_v59 = vpop.permute.xlu1 %1018  ;;  %v1199_v53 = vadd.f32 %v1167_v35, %v903_v42  ;;  %v3830_v42 = vld [vmem:[%s5759_s0 + $0x16a] ss:$2 sm:$0xff] }
  0xb6   :  { %v1014_v60 = vpop.permute.xlu0 %1013  ;;  %230 = vperm.xlu1 %4508, %v3764_v56   ;;  %v1170_v45 = vmul.f32 %v4998_v14, %v1019_v59  ;;  %v905_v56 = vadd.f32 %v873_v37, %v609_v23  ;;  %v5058_v59 = vld [vmem:[%s5761_s2] ss:$0 sm:$0xff] }
  0xb7   :  { %225 = vperm.xlu0 %4507, %v3763_v57   ;;  %v1169_v48 = vmul.f32 %v4998_v14, %v1014_v60  ;;  %v875_v57 = vmul.f32 %v4981_v3, %v4932_v47  ;;  %v3827_v60 = vld [vmem:[%s5759_s0 + $0x13a] ss:$2 sm:$0xff] }
  0xb8   :  { %v1202_v2 = vadd.f32 %v1170_v45, %v906_v33 }
  0xb9   :  { %v4987_v8 = vpop.permute.xlu1 %1028  ;;  %v1201_v4 = vadd.f32 %v1169_v48, %v905_v56  ;;  %v907_v17 = vadd.f32 %v875_v57, %v611_v43 }
  0xba   :  { %v4989_v11 = vpop.permute.xlu0 %1023  ;;  %516 = vperm.xlu1 %4508, %v3795_v63   ;;  %v613_v63 = vadd.f32 %v581_v40, %v285_v21  ;;  %v1172_v47 = vmul.f32 %v4998_v14, %v4987_v8  ;;  %v877_v8 = vmul.f32 %v4981_v3, %v4942_v51 }
  0xbb   :  { %511 = vperm.xlu0 %4507, %v3794_v0   ;;  %v1171_v7 = vmul.f32 %v4998_v14, %v4989_v11  ;;  %v3829_v11 = vld [vmem:[%s5759_s0 + $0x15a] ss:$2 sm:$0xff] }
  0xbd   :  { %v5017_v28 = vpop.permute.xlu1 %1038  ;;  %v1203_v32 = vadd.f32 %v1171_v7, %v907_v17 }
  0xbe   :  { %v5019_v31 = vpop.permute.xlu0 %1033  ;;  %526 = vperm.xlu1 %4508, %v3797_v6   ;;  %v1174_v50 = vmul.f32 %v4998_v14, %v5017_v28  ;;  %v909_v28 = vadd.f32 %v877_v8, %v613_v63  ;;  %v3864_v8 = vld [vmem:[%s5759_s0 + $0x16b] ss:$2 sm:$0xff] }
  0xbf   :  { %521 = vperm.xlu0 %4507, %v3796_v9   ;;  %v908_v9 = vadd.f32 %v876_v34, %v612_v38  ;;  %v1173_v51 = vmul.f32 %v4998_v14, %v5019_v31  ;;  %v3831_v31 = vld [vmem:[%s5759_s0 + $0x17a] ss:$2 sm:$0xff] }
  0xc1   :  { %v1305_v49 = vpop.permute.xlu1 %1304  ;;  %v1204_v27 = vadd.f32 %v1172_v47, %v908_v9  ;;  %v3860_v47 = vld [vmem:[%s5759_s0 + $0x12b] ss:$2 sm:$0xff] }
  0xc2   :  { %v1300_v52 = vpop.permute.xlu0 %1299  ;;  %v1464_v54 = vmul.f32 %v5035_v22, %v1305_v49  ;;  %792 = vperm.xlu1 %4508, %v3825_v25   ;;  %v910_v25 = vadd.f32 %v878_v18, %v614_v62  ;;  %v3865_v18 = vld [vmem:[%s5759_s0 + $0x17b] ss:$2 sm:$0xff] }
  0xc3   :  { %v1463_v55 = vmul.f32 %v5035_v22, %v1300_v52  ;;  %787 = vperm.xlu0 %4507, %v3824_v26  }
  0xc4   :  { %v1496_v0 = vadd.f32 %v1464_v54, %v1200_v44  ;;  %v1206_v43 = vadd.f32 %v1174_v50, %v910_v25  ;;  %v1205_v44 = vadd.f32 %v1173_v51, %v909_v28  ;;  %v3895_v51 = vld [vmem:[%s5759_s0 + $0x13c] ss:$2 sm:$0xff] }
  0xc5   :  { %v1495_v1 = vadd.f32 %v1463_v55, %v1199_v53  ;;  %v1315_v12 = vpop.permute.xlu1 %1314  ;;  %v3859_v55 = vld [vmem:[%s5759_s0 + $0x11b] ss:$2 sm:$0xff]  ;;  %v3899_v28 = vld [vmem:[%s5759_s0 + $0x17c] ss:$2 sm:$0xff] }
  0xc6   :  { %v1310_v13 = vpop.permute.xlu0 %1309  ;;  %v1535_v10 = vadd.f32 %v5058_v59, %v1496_v0  ;;  %v1466_v16 = vmul.f32 %v5035_v22, %v1315_v12  ;;  %802 = vperm.xlu1 %4508, %v3827_v60   ;;  %v3858_v60 = vld [vmem:[%s5759_s0 + $0x10b] ss:$2 sm:$0xff] }
  0xc7   :  { %v1534_v15 = vadd.f32 %v5058_v59, %v1495_v1  ;;  %v1465_v6 = vmul.f32 %v5035_v22, %v1310_v13  ;;  %797 = vperm.xlu0 %4507, %v3826_v46   ;;  %v3861_v46 = vld [vmem:[%s5759_s0 + $0x13b] ss:$2 sm:$0xff] }
  0xc8   :  { %v1567_v19 = vmax.f32 %v1535_v10, 0.0  ;;  %v1498_v23 = vadd.f32 %v1466_v16, %v1202_v2  ;;  %v3863_v16 = vld [vmem:[%s5759_s0 + $0x15b] ss:$2 sm:$0xff] }
  0xc9   :  { %v1566_v20 = vmax.f32 %v1534_v15, 0.0  ;;  %v1497_v5 = vadd.f32 %v1465_v6, %v1201_v4  ;;  %v1325_v29 = vpop.permute.xlu1 %1324  ;;  %v3862_v6 = vld [vmem:[%s5759_s0 + $0x14b] ss:$2 sm:$0xff] }
  0xca   :  { %v1320_v35 = vpop.permute.xlu0 %1319  ;;  %1600 = vst.msk [vmem:[#allocation2 + $0xa] sm:$0xff] %vm1598_vm1, %v1567_v19  ;;  %v1537_v21 = vadd.f32 %v5058_v59, %v1498_v23  ;;  %v1468_v36 = vmul.f32 %v5035_v22, %v1325_v29  ;;  %812 = vperm.xlu1 %4508, %v3829_v11   ;;  %v3894_v29 = vld [vmem:[%s5759_s0 + $0x12c] ss:$2 sm:$0xff] }
  0xcb   :  { %1599 = vst.msk [vmem:[#allocation2 + $0x2] sm:$0xff] %vm1598_vm1, %v1566_v20  ;;  %v1536_v30 = vadd.f32 %v5058_v59, %v1497_v5  ;;  %v1467_v37 = vmul.f32 %v5035_v22, %v1320_v35  ;;  %807 = vperm.xlu0 %4507, %v3828_v24   ;;  %v3893_v24 = vld [vmem:[%s5759_s0 + $0x11c] ss:$2 sm:$0xff] }
  0xcc   :  { %v1569_v26 = vmax.f32 %v1537_v21, 0.0  ;;  %v1500_v39 = vadd.f32 %v1468_v36, %v1204_v27  ;;  %v3892_v27 = vld [vmem:[%s5759_s0 + $0x10c] ss:$2 sm:$0xff] }
  0xcd   :  { %v1568_v38 = vmax.f32 %v1536_v30, 0.0  ;;  %v1499_v40 = vadd.f32 %v1467_v37, %v1203_v32  ;;  %v1335_v45 = vpop.permute.xlu1 %1334  ;;  %v3897_v30 = vld [vmem:[%s5759_s0 + $0x15c] ss:$2 sm:$0xff]  ;;  %v3896_v36 = vld [vmem:[%s5759_s0 + $0x14c] ss:$2 sm:$0xff] }
  0xce   :  { %v1330_v48 = vpop.permute.xlu0 %1329  ;;  %1602 = vst.msk [vmem:[#allocation2 + $0x1a] sm:$0xff] %vm1598_vm1, %v1569_v26  ;;  %v1539_v49 = vadd.f32 %v5058_v59, %v1500_v39  ;;  %v1470_v53 = vmul.f32 %v5035_v22, %v1335_v45  ;;  %822 = vperm.xlu1 %4508, %v3831_v31   ;;  %v3898_v31 = vld [vmem:[%s5759_s0 + $0x16c] ss:$2 sm:$0xff] }
  0xcf   :  { %1601 = vst.msk [vmem:[#allocation2 + $0x12] sm:$0xff] %vm1598_vm1, %v1568_v38  ;;  %v1538_v52 = vadd.f32 %v5058_v59, %v1499_v40  ;;  %v1469_v54 = vmul.f32 %v5035_v22, %v1330_v48  ;;  %817 = vperm.xlu0 %4507, %v3830_v42   ;;  %v3766_v39 = vld [vmem:[%s5759_s0 + $0x198] ss:$2 sm:$0xff]  ;;  %v3765_v40 = vld [vmem:[%s5759_s0 + $0x188] ss:$2 sm:$0xff] }
  0xd0   :  { %v1571_v33 = vmax.f32 %v1539_v49, 0.0  ;;  %v1502_v34 = vadd.f32 %v1470_v53, %v1206_v43  ;;  %v3767_v45 = vld [vmem:[%s5759_s0 + $0x1a8] ss:$2 sm:$0xff]  ;;  %v3798_v53 = vld [vmem:[%s5759_s0 + $0x189] ss:$2 sm:$0xff] }
  0xd1   :  { %v1570_v56 = vmax.f32 %v1538_v52, 0.0  ;;  %v1501_v57 = vadd.f32 %v1469_v54, %v1205_v44  ;;  %v5112_v62 = vpop.permute.xlu1 %160  ;;  %v3768_v44 = vld [vmem:[%s5759_s0 + $0x1b8] ss:$2 sm:$0xff]  ;;  %v3799_v52 = vld [vmem:[%s5759_s0 + $0x199] ss:$2 sm:$0xff] }
  0xd2   :  { %v5114_v63 = vpop.permute.xlu0 %155  ;;  %1604 = vst.msk [vmem:[#allocation2 + $0x2a] sm:$0xff] %vm1598_vm1, %v1571_v33  ;;  %v1541_v0 = vadd.f32 %v5058_v59, %v1502_v34  ;;  %1088 = vperm.xlu1 %4508, %v3859_v55   ;;  %v1673_v13 = vld [vmem:[#allocation2 + $0x1] ss:$2 sm:$0xff] }
  0xd3   :  { %1603 = vst.msk [vmem:[#allocation2 + $0x22] sm:$0xff] %vm1598_vm1, %v1570_v56  ;;  %v1540_v1 = vadd.f32 %v5058_v59, %v1501_v57  ;;  %1083 = vperm.xlu0 %4507, %v3858_v60   ;;  %v3801_v33 = vld [vmem:[%s5759_s0 + $0x1b9] ss:$2 sm:$0xff]  ;;  %v3800_v56 = vld [vmem:[%s5759_s0 + $0x1a9] ss:$2 sm:$0xff] }
  0xd4   :  { %v1573_v2 = vmax.f32 %v1541_v0, 0.0  ;;  %v3770_v60 = vld [vmem:[%s5759_s0 + $0x1d8] ss:$2 sm:$0xff]  ;;  %v3769_v0 = vld [vmem:[%s5759_s0 + $0x1c8] ss:$2 sm:$0xff] }
  0xd5   :  { %v1572_v4 = vmax.f32 %v1540_v1, 0.0  ;;  %v5126_v7 = vpop.permute.xlu1 %170 }
  0xd6   :  { %v5128_v12 = vpop.permute.xlu0 %165  ;;  %v1675_v10 = vld [vmem:[#allocation2 + $0x11] ss:$2 sm:$0xff]  ;;  %1606 = vst.msk [vmem:[#allocation2 + $0x3a] sm:$0xff] %vm1598_vm1, %v1573_v2  ;;  %1098 = vperm.xlu1 %4508, %v3861_v46   ;;  %v3772_v2 = vld [vmem:[%s5759_s0 + $0x1f8] ss:$2 sm:$0xff] }
  0xd7   :  { %1605 = vst.msk [vmem:[#allocation2 + $0x32] sm:$0xff] %vm1598_vm1, %v1572_v4  ;;  %v1704_v15 = vpack.c.bf16 %v1675_v10, %v1673_v13  ;;  %1093 = vperm.xlu0 %4507, %v3860_v47   ;;  %v3771_v4 = vld [vmem:[%s5759_s0 + $0x1e8] ss:$2 sm:$0xff]  ;;  %v3803_v10 = vld [vmem:[%s5759_s0 + $0x1d9] ss:$2 sm:$0xff] }
  0xd9   :  { %4182 = vmatprep.mubr.msk.bf16.mxu0 %vm1598_vm1, %v1704_v15  ;;  %v5139_v9 = vpop.permute.xlu1 %456 }
  0xda   :  { %v5141_v17 = vpop.permute.xlu0 %451  ;;  %1108 = vperm.xlu1 %4508, %v3863_v16   ;;  %v1677_v20 = vld [vmem:[#allocation2 + $0x21] ss:$2 sm:$0xff]  ;;  %v584_v15 = vmul.f32 %v4959_v58, %v5139_v9  ;;  %v287_v9 = vmul.f32 %v4964_v61, %v5114_v63 }
  0xdb   :  { %1103 = vperm.xlu0 %4507, %v3862_v6   ;;  %v583_v16 = vmul.f32 %v4959_v58, %v5141_v17  ;;  %v3802_v6 = vld [vmem:[%s5759_s0 + $0x1c9] ss:$2 sm:$0xff]  ;;  %v290_v17 = vmul.f32 %v4964_v61, %v5126_v7 }
  0xdc   :  { %v3804_v63 = vld [vmem:[%s5759_s0 + $0x1e9] ss:$2 sm:$0xff] }
  0xdd   :  { %v5149_v11 = vpop.permute.xlu1 %466 }
  0xde   :  { %v5151_v19 = vpop.permute.xlu0 %461  ;;  %v1679_v23 = vld [vmem:[#allocation2 + $0x31] ss:$2 sm:$0xff]  ;;  %1118 = vperm.xlu1 %4508, %v3865_v18   ;;  %v586_v18 = vmul.f32 %v4959_v58, %v5149_v11 }
  0xdf   :  { %v1705_v5 = vpack.c.bf16 %v1679_v23, %v1677_v20  ;;  %1113 = vperm.xlu0 %4507, %v3864_v8   ;;  %v585_v8 = vmul.f32 %v4959_v58, %v5151_v19  ;;  %v3805_v11 = vld [vmem:[%s5759_s0 + $0x1f9] ss:$2 sm:$0xff] }
  0xe1   :  { %4183 = vmatmul.mubr.msk.bf16.vlgmr.msra.gmra.mrb[0].mxu0 %vm1598_vm1, %v1705_v5  ;;  %v5160_v32 = vpop.permute.xlu1 %180  ;;  %v288_v5 = vmul.f32 %v4964_v61, %v5112_v62 }
  0xe2   :  { %v5162_v50 = vpop.permute.xlu0 %175  ;;  %1384 = vperm.xlu1 %4508, %v3893_v24   ;;  %v289_v24 = vmul.f32 %v4964_v61, %v5128_v12 }
  0xe3   :  { %1379 = vperm.xlu0 %4507, %v3892_v27   ;;  %v616_v19 = vadd.f32 %v584_v15, %v288_v5  ;;  %v615_v27 = vadd.f32 %v583_v16, %v287_v9 }
  0xe4   :  { %v617_v7 = vadd.f32 %v585_v8, %v289_v24 }
  0xe5   :  { %v5170_v35 = vpop.permute.xlu1 %190 }
  0xe6   :  { %v5172_v21 = vpop.permute.xlu0 %185  ;;  %1394 = vperm.xlu1 %4508, %v3895_v51  }
  0xe7   :  { %1389 = vperm.xlu0 %4507, %v3894_v29   ;;  %v618_v29 = vadd.f32 %v586_v18, %v290_v17  ;;  %v3834_v18 = vld [vmem:[%s5759_s0 + $0x1aa] ss:$2 sm:$0xff] }
  0xe9   :  { %v5180_v37 = vpop.permute.xlu1 %476 }
  0xea   :  { %v5182_v25 = vpop.permute.xlu0 %471  ;;  %1404 = vperm.xlu1 %4508, %v3897_v30   ;;  %v588_v12 = vmul.f32 %v4959_v58, %v5180_v37  ;;  %v294_v37 = vmul.f32 %v4964_v61, %v5170_v35 }
  0xeb   :  { %1399 = vperm.xlu0 %4507, %v3896_v36   ;;  %v587_v30 = vmul.f32 %v4959_v58, %v5182_v25  ;;  %v293_v25 = vmul.f32 %v4964_v61, %v5172_v21  ;;  %v3832_v21 = vld [vmem:[%s5759_s0 + $0x18a] ss:$2 sm:$0xff] }
  0xed   :  { %v5190_v26 = vpop.permute.xlu1 %486 }
  0xee   :  { %v5192_v38 = vpop.permute.xlu0 %481  ;;  %1414 = vperm.xlu1 %4508, %v3899_v28  }
  0xef   :  { %1409 = vperm.xlu0 %4507, %v3898_v31   ;;  %v292_v31 = vmul.f32 %v4964_v61, %v5160_v32  ;;  %v3833_v32 = vld [vmem:[%s5759_s0 + $0x19a] ss:$2 sm:$0xff] }
  0xf1   :  { %v753_v42 = vpop.permute.xlu1 %752 }
  0xf2   :  { %v748_v43 = vpop.permute.xlu0 %747  ;;  %240 = vperm.xlu1 %4508, %v3766_v39   ;;  %v880_v51 = vmul.f32 %v4981_v3, %v753_v42  ;;  %v291_v39 = vmul.f32 %v4964_v61, %v5162_v50  ;;  %v590_v50 = vmul.f32 %v4959_v58, %v5190_v26 }
  0xf3   :  { %235 = vperm.xlu0 %4507, %v3765_v40   ;;  %v879_v62 = vmul.f32 %v4981_v3, %v748_v43 }
  0xf5   :  { %v763_v48 = vpop.permute.xlu1 %762  ;;  %v911_v35 = vadd.f32 %v879_v62, %v615_v27 }
  0xf6   :  { %v758_v49 = vpop.permute.xlu0 %757  ;;  %250 = vperm.xlu1 %4508, %v3768_v44   ;;  %v882_v43 = vmul.f32 %v4981_v3, %v763_v48  ;;  %v620_v48 = vadd.f32 %v588_v12, %v292_v31  ;;  %v3836_v31 = vld [vmem:[%s5759_s0 + $0x1ca] ss:$2 sm:$0xff] }
  0xf7   :  { %245 = vperm.xlu0 %4507, %v3767_v45   ;;  %v881_v44 = vmul.f32 %v4981_v3, %v758_v49  ;;  %v589_v45 = vmul.f32 %v4959_v58, %v5192_v38 }
  0xf9   :  { %v5212_v54 = vpop.permute.xlu1 %772  ;;  %v621_v15 = vadd.f32 %v589_v45, %v293_v25 }
  0xfa   :  { %v5214_v55 = vpop.permute.xlu0 %767  ;;  %536 = vperm.xlu1 %4508, %v3799_v52   ;;  %v912_v52 = vadd.f32 %v880_v51, %v616_v19 }
  0xfb   :  { %531 = vperm.xlu0 %4507, %v3798_v53   ;;  %v619_v53 = vadd.f32 %v587_v30, %v291_v39 }
  0xfd   :  { %v5222_v34 = vpop.permute.xlu1 %782 }
  0xfe   :  { %v5224_v57 = vpop.permute.xlu0 %777  ;;  %546 = vperm.xlu1 %4508, %v3801_v33  }
  0xff   :  { %541 = vperm.xlu0 %4507, %v3800_v56  }
 0x101   :  { %v1049_v1 = vpop.permute.xlu1 %1048 }
 0x102   :  { %v1044_v46 = vpop.permute.xlu0 %1043  ;;  %260 = vperm.xlu1 %4508, %v3770_v60   ;;  %v1176_v40 = vmul.f32 %v4998_v14, %v1049_v1 }
 0x103   :  { %255 = vperm.xlu0 %4507, %v3769_v0   ;;  %v1175_v42 = vmul.f32 %v4998_v14, %v1044_v46  ;;  %v914_v46 = vadd.f32 %v882_v43, %v618_v29 }
 0x104   :  { %v1208_v0 = vadd.f32 %v1176_v40, %v912_v52 }
 0x105   :  { %v1059_v47 = vpop.permute.xlu1 %1058  ;;  %v1207_v1 = vadd.f32 %v1175_v42, %v911_v35 }
 0x106   :  { %v1054_v13 = vpop.permute.xlu0 %1053  ;;  %270 = vperm.xlu1 %4508, %v3772_v2   ;;  %v1178_v49 = vmul.f32 %v4998_v14, %v1059_v47  ;;  %v913_v2 = vadd.f32 %v881_v44, %v617_v7  ;;  %v3835_v47 = vld [vmem:[%s5759_s0 + $0x1ba] ss:$2 sm:$0xff] }
 0x107   :  { %265 = vperm.xlu0 %4507, %v3771_v4   ;;  %v1177_v33 = vmul.f32 %v4998_v14, %v1054_v13  ;;  %v884_v4 = vmul.f32 %v4981_v3, %v5212_v54  ;;  %v622_v13 = vadd.f32 %v590_v50, %v294_v37 }
 0x108   :  { %v1210_v8 = vadd.f32 %v1178_v49, %v914_v46 }
 0x109   :  { %v1069_v20 = vpop.permute.xlu1 %1068  ;;  %v1209_v5 = vadd.f32 %v1177_v33, %v913_v2  ;;  %v916_v51 = vadd.f32 %v884_v4, %v620_v48  ;;  %v3838_v48 = vld [vmem:[%s5759_s0 + $0x1ea] ss:$2 sm:$0xff] }
 0x10a   :  { %v1064_v23 = vpop.permute.xlu0 %1063  ;;  %556 = vperm.xlu1 %4508, %v3803_v10   ;;  %v883_v10 = vmul.f32 %v4981_v3, %v5214_v55  ;;  %v1180_v54 = vmul.f32 %v4998_v14, %v1069_v20  ;;  %v885_v20 = vmul.f32 %v4981_v3, %v5224_v57 }
 0x10b   :  { %551 = vperm.xlu0 %4507, %v3802_v6   ;;  %v1179_v9 = vmul.f32 %v4998_v14, %v1064_v23  ;;  %v3837_v23 = vld [vmem:[%s5759_s0 + $0x1da] ss:$2 sm:$0xff] }
 0x10c   :  { %v915_v62 = vadd.f32 %v883_v10, %v619_v53  ;;  %v1212_v39 = vadd.f32 %v1180_v54, %v916_v51  ;;  %v3868_v54 = vld [vmem:[%s5759_s0 + $0x1ab] ss:$2 sm:$0xff] }
 0x10d   :  { %v5272_v36 = vpop.permute.xlu1 %1078 }
 0x10e   :  { %v5274_v28 = vpop.permute.xlu0 %1073  ;;  %566 = vperm.xlu1 %4508, %v3805_v11   ;;  %v1211_v40 = vadd.f32 %v1179_v9, %v915_v62 }
 0x10f   :  { %561 = vperm.xlu0 %4507, %v3804_v63   ;;  %v886_v63 = vmul.f32 %v4981_v3, %v5222_v34  ;;  %v1182_v34 = vmul.f32 %v4998_v14, %v5272_v36  ;;  %v1181_v57 = vmul.f32 %v4998_v14, %v5274_v28  ;;  %v917_v36 = vadd.f32 %v885_v20, %v621_v15  ;;  %v3839_v28 = vld [vmem:[%s5759_s0 + $0x1fa] ss:$2 sm:$0xff]  ;;  %v3872_v20 = vld [vmem:[%s5759_s0 + $0x1eb] ss:$2 sm:$0xff] }
 0x111   :  { %v1345_v56 = vpop.permute.xlu1 %1344  ;;  %v918_v50 = vadd.f32 %v886_v63, %v622_v13  ;;  %v1213_v49 = vadd.f32 %v1181_v57, %v917_v36  ;;  %v3873_v63 = vld [vmem:[%s5759_s0 + $0x1fb] ss:$2 sm:$0xff]  ;;  %v3903_v57 = vld [vmem:[%s5759_s0 + $0x1bc] ss:$2 sm:$0xff] }
 0x112   :  { %v1340_v60 = vpop.permute.xlu0 %1339  ;;  %v1472_v26 = vmul.f32 %v5035_v22, %v1345_v56  ;;  %832 = vperm.xlu1 %4508, %v3833_v32   ;;  %v3907_v36 = vld [vmem:[%s5759_s0 + $0x1fc] ss:$2 sm:$0xff] }
 0x113   :  { %v1471_v38 = vmul.f32 %v5035_v22, %v1340_v60  ;;  %827 = vperm.xlu0 %4507, %v3832_v21   ;;  %v1214_v53 = vadd.f32 %v1182_v34, %v918_v50 }
 0x114   :  { %v1504_v16 = vadd.f32 %v1472_v26, %v1208_v0 }
 0x115   :  { %v1503_v6 = vadd.f32 %v1471_v38, %v1207_v1  ;;  %v1355_v55 = vpop.permute.xlu1 %1354  ;;  %v3867_v38 = vld [vmem:[%s5759_s0 + $0x19b] ss:$2 sm:$0xff] }
 0x116   :  { %v1350_v17 = vpop.permute.xlu0 %1349  ;;  %v1543_v24 = vadd.f32 %v5058_v59, %v1504_v16  ;;  %v1474_v19 = vmul.f32 %v5035_v22, %v1355_v55  ;;  %842 = vperm.xlu1 %4508, %v3835_v47   ;;  %v3866_v47 = vld [vmem:[%s5759_s0 + $0x18b] ss:$2 sm:$0xff] }
 0x117   :  { %v1542_v11 = vadd.f32 %v5058_v59, %v1503_v6  ;;  %v1473_v27 = vmul.f32 %v5035_v22, %v1350_v17  ;;  %837 = vperm.xlu0 %4507, %v3834_v18   ;;  %v3869_v18 = vld [vmem:[%s5759_s0 + $0x1bb] ss:$2 sm:$0xff] }
 0x118   :  { %v1575_v29 = vmax.f32 %v1543_v24, 0.0  ;;  %v1506_v12 = vadd.f32 %v1474_v19, %v1210_v8  ;;  %v3871_v19 = vld [vmem:[%s5759_s0 + $0x1db] ss:$2 sm:$0xff] }
 0x119   :  { %v1574_v7 = vmax.f32 %v1542_v11, 0.0  ;;  %v1505_v30 = vadd.f32 %v1473_v27, %v1209_v5  ;;  %v1365_v42 = vpop.permute.xlu1 %1364  ;;  %v3870_v27 = vld [vmem:[%s5759_s0 + $0x1cb] ss:$2 sm:$0xff] }
 0x11a   :  { %v1360_v37 = vpop.permute.xlu0 %1359  ;;  %1608 = vst.msk [vmem:[#allocation2 + $0x4a] sm:$0xff] %vm1598_vm1, %v1575_v29  ;;  %v1545_v25 = vadd.f32 %v5058_v59, %v1506_v12  ;;  %v1476_v44 = vmul.f32 %v5035_v22, %v1365_v42  ;;  %852 = vperm.xlu1 %4508, %v3837_v23   ;;  %v3902_v42 = vld [vmem:[%s5759_s0 + $0x1ac] ss:$2 sm:$0xff] }
 0x11b   :  { %1607 = vst.msk [vmem:[#allocation2 + $0x42] sm:$0xff] %vm1598_vm1, %v1574_v7  ;;  %v1544_v43 = vadd.f32 %v5058_v59, %v1505_v30  ;;  %v1475_v32 = vmul.f32 %v5035_v22, %v1360_v37  ;;  %847 = vperm.xlu0 %4507, %v3836_v31   ;;  %v3901_v31 = vld [vmem:[%s5759_s0 + $0x19c] ss:$2 sm:$0xff] }
 0x11c   :  { %v1577_v45 = vmax.f32 %v1545_v25, 0.0  ;;  %v1508_v35 = vadd.f32 %v1476_v44, %v1212_v39  ;;  %v3900_v39 = vld [vmem:[%s5759_s0 + $0x18c] ss:$2 sm:$0xff] }
 0x11d   :  { %v1576_v52 = vmax.f32 %v1544_v43, 0.0  ;;  %v1507_v21 = vadd.f32 %v1475_v32, %v1211_v40  ;;  %v1375_v33 = vpop.permute.xlu1 %1374  ;;  %v3905_v43 = vld [vmem:[%s5759_s0 + $0x1dc] ss:$2 sm:$0xff]  ;;  %v3904_v44 = vld [vmem:[%s5759_s0 + $0x1cc] ss:$2 sm:$0xff] }
 0x11e   :  { %v1370_v56 = vpop.permute.xlu0 %1369  ;;  %1610 = vst.msk [vmem:[#allocation2 + $0x5a] sm:$0xff] %vm1598_vm1, %v1577_v45  ;;  %v1547_v60 = vadd.f32 %v5058_v59, %v1508_v35  ;;  %v1478_v1 = vmul.f32 %v5035_v22, %v1375_v33  ;;  %862 = vperm.xlu1 %4508, %v3839_v28   ;;  %v3906_v28 = vld [vmem:[%s5759_s0 + $0x1ec] ss:$2 sm:$0xff]  ;;  %v4510_v35 = vld [vmem:[%s5762_s3] sm:$0xff]  }
 0x11f   :  { %1609 = vst.msk [vmem:[#allocation2 + $0x52] sm:$0xff] %vm1598_vm1, %v1576_v52  ;;  %v1546_v0 = vadd.f32 %v5058_v59, %v1507_v21  ;;  %v1477_v26 = vmul.f32 %v5035_v22, %v1370_v56  ;;  %857 = vperm.xlu0 %4507, %v3838_v48   ;;  %4198 = vmatprep.subr.bf16.mxu0 %v4510_v35 }
 0x120   :  { %v1579_v46 = vmax.f32 %v1547_v60, 0.0  ;;  %v1510_v4 = vadd.f32 %v1478_v1, %v1214_v53  ;;  %4199 = vmatpush3.bf16.msra.mxu0 %v4510_v35 }
 0x121   :  { %v1578_v2 = vmax.f32 %v1546_v0, 0.0  ;;  %v1509_v10 = vadd.f32 %v1477_v26, %v1213_v49  ;;  %v5356_v13 = vpop.permute.xlu1 %200 }
 0x122   :  { %v5358_v15 = vpop.permute.xlu0 %195  ;;  %1612 = vst.msk [vmem:[#allocation2 + $0x6a] sm:$0xff] %vm1598_vm1, %v1579_v46  ;;  %v1549_v16 = vadd.f32 %v5058_v59, %v1510_v4  ;;  %1128 = vperm.xlu1 %4508, %v3867_v38   ;;  %v1681_v17 = vld [vmem:[#allocation2 + $0x41] ss:$2 sm:$0xff]  ;;  %v5424_v38 = vld [vmem:[%s5762_s3 + $0x10] sm:$0xff]  }
 0x123   :  { %1611 = vst.msk [vmem:[#allocation2 + $0x62] sm:$0xff] %vm1598_vm1, %v1578_v2  ;;  %v1548_v6 = vadd.f32 %v5058_v59, %v1509_v10  ;;  %1123 = vperm.xlu0 %4507, %v3866_v47   ;;  %4216 = vmatprep.subr.bf16.mxu0 %v5424_v38 }
 0x124   :  { %v1581_v8 = vmax.f32 %v1549_v16, 0.0 }
 0x125   :  { %v1580_v5 = vmax.f32 %v1548_v6, 0.0  ;;  %v5370_v9 = vpop.permute.xlu1 %210 }
 0x126   :  { %v5372_v55 = vpop.permute.xlu0 %205  ;;  %v1683_v24 = vld [vmem:[#allocation2 + $0x51] ss:$2 sm:$0xff]  ;;  %1614 = vst.msk [vmem:[#allocation2 + $0x7a] sm:$0xff] %vm1598_vm1, %v1581_v8  ;;  %1138 = vperm.xlu1 %4508, %v3869_v18   ;;  %v296_v8 = vmul.f32 %v4964_v61, %v5356_v13 }
 0x127   :  { %1613 = vst.msk [vmem:[#allocation2 + $0x72] sm:$0xff] %vm1598_vm1, %v1580_v5  ;;  %v1706_v11 = vpack.c.bf16 %v1683_v24, %v1681_v17  ;;  %1133 = vperm.xlu0 %4507, %v3868_v54   ;;  %v295_v5 = vmul.f32 %v4964_v61, %v5358_v15  ;;  %v298_v54 = vmul.f32 %v4964_v61, %v5370_v9 }
 0x128   :  { %v297_v17 = vmul.f32 %v4964_v61, %v5372_v55 }
 0x129   :  { %4186 = vmatprep.mubr.msk.bf16.mxu0 %vm1598_vm1, %v1706_v11  ;;  %v497_v51 = vpop.permute.xlu1 %496 }
 0x12a   :  { %v492_v62 = vpop.permute.xlu0 %491  ;;  %1148 = vperm.xlu1 %4508, %v3871_v19   ;;  %v1685_v7 = vld [vmem:[#allocation2 + $0x61] ss:$2 sm:$0xff]  ;;  %v592_v4 = vmul.f32 %v4959_v58, %v497_v51 }
 0x12b   :  { %1143 = vperm.xlu0 %4507, %v3870_v27   ;;  %v591_v10 = vmul.f32 %v4959_v58, %v492_v62 }
 0x12c   :  { %v624_v11 = vadd.f32 %v592_v4, %v296_v8 }
 0x12d   :  { %v507_v23 = vpop.permute.xlu1 %506  ;;  %v623_v19 = vadd.f32 %v591_v10, %v295_v5 }
 0x12e   :  { %v502_v29 = vpop.permute.xlu0 %501  ;;  %v1687_v12 = vld [vmem:[#allocation2 + $0x71] ss:$2 sm:$0xff]  ;;  %1158 = vperm.xlu1 %4508, %v3873_v63   ;;  %v594_v16 = vmul.f32 %v4959_v58, %v507_v23 }
 0x12f   :  { %v1707_v30 = vpack.c.bf16 %v1687_v12, %v1685_v7  ;;  %1153 = vperm.xlu0 %4507, %v3872_v20   ;;  %v593_v6 = vmul.f32 %v4959_v58, %v502_v29 }
 0x130   :  { %v626_v62 = vadd.f32 %v594_v16, %v298_v54 }
 0x131   :  { %4187 = vmatmul.mubr.msk.bf16.gmra.mrb[4].mxu0 %vm1598_vm1, %v1707_v30  ;;  %v221_v40 = vpop.permute.xlu1 %220  ;;  %v625_v63 = vadd.f32 %v593_v6, %v297_v17 }
 0x132   :  { %v216_v34 = vpop.permute.xlu0 %215  ;;  %1424 = vperm.xlu1 %4508, %v3901_v31   ;;  %v300_v23 = vmul.f32 %v4964_v61, %v221_v40 }
 0x133   :  { %1419 = vperm.xlu0 %4507, %v3900_v39   ;;  %v299_v9 = vmul.f32 %v4964_v61, %v216_v34 }
 0x135   :  { %v231_v37 = vpop.permute.xlu1 %230 }
 0x136   :  { %v226_v25 = vpop.permute.xlu0 %225  ;;  %1434 = vperm.xlu1 %4508, %v3903_v57   ;;  %v302_v7 = vmul.f32 %v4964_v61, %v231_v37 }
 0x137   :  { %1429 = vperm.xlu0 %4507, %v3902_v42   ;;  %v301_v39 = vmul.f32 %v4964_v61, %v226_v25 }
 0x139   :  { %v517_v32 = vpop.permute.xlu1 %516 }
 0x13a   :  { %v512_v50 = vpop.permute.xlu0 %511  ;;  %1444 = vperm.xlu1 %4508, %v3905_v43   ;;  %v596_v13 = vmul.f32 %v4959_v58, %v517_v32 }
 0x13b   :  { %1439 = vperm.xlu0 %4507, %v3904_v44   ;;  %v595_v55 = vmul.f32 %v4959_v58, %v512_v50 }
 0x13c   :  { %v628_v34 = vadd.f32 %v596_v13, %v300_v23 }
 0x13d   :  { %v527_v45 = vpop.permute.xlu1 %526 }
 0x13e   :  { %v522_v52 = vpop.permute.xlu0 %521  ;;  %1454 = vperm.xlu1 %4508, %v3907_v36   ;;  %v598_v12 = vmul.f32 %v4959_v58, %v527_v45  ;;  %v627_v36 = vadd.f32 %v595_v55, %v299_v9 }
 0x13f   :  { %1449 = vperm.xlu0 %4507, %v3906_v28   ;;  %v597_v57 = vmul.f32 %v4959_v58, %v522_v52 }
 0x140   :  { %v630_v61 = vadd.f32 %v598_v12, %v302_v7 }
 0x141   :  { %v793_v21 = vpop.permute.xlu1 %792 }
 0x142   :  { %v788_v48 = vpop.permute.xlu0 %787  ;;  %v888_v24 = vmul.f32 %v4981_v3, %v793_v21  ;;  %v629_v21 = vadd.f32 %v597_v57, %v301_v39 }
 0x143   :  { %v887_v27 = vmul.f32 %v4981_v3, %v788_v48 }
 0x144   :  { %v920_v30 = vadd.f32 %v888_v24, %v624_v11 }
 0x145   :  { %v803_v53 = vpop.permute.xlu1 %802  ;;  %v919_v42 = vadd.f32 %v887_v27, %v623_v19 }
 0x146   :  { %v798_v49 = vpop.permute.xlu0 %797  ;;  %v890_v31 = vmul.f32 %v4981_v3, %v803_v53 }
 0x147   :  { %v889_v40 = vmul.f32 %v4981_v3, %v798_v49 }
 0x148   :  { %v922_v25 = vadd.f32 %v890_v31, %v626_v62 }
 0x149   :  { %v813_v33 = vpop.permute.xlu1 %812  ;;  %v921_v48 = vadd.f32 %v889_v40, %v625_v63 }
 0x14a   :  { %v808_v56 = vpop.permute.xlu0 %807  ;;  %v892_v58 = vmul.f32 %v4981_v3, %v813_v33 }
 0x14b   :  { %v891_v53 = vmul.f32 %v4981_v3, %v808_v56 }
 0x14c   :  { %v924_v5 = vadd.f32 %v892_v58, %v628_v34 }
 0x14d   :  { %v5417_v60 = vpop.permute.xlu1 %822  ;;  %v923_v24 = vadd.f32 %v891_v53, %v627_v36 }
 0x14e   :  { %v5419_v0 = vpop.permute.xlu0 %817  ;;  %v894_v56 = vmul.f32 %v4981_v3, %v5417_v60 }
 0x150   :  { %v926_v9 = vadd.f32 %v894_v56, %v630_v61 }
 0x151   :  { %v1089_v1 = vpop.permute.xlu1 %1088 }
 0x152   :  { %v1084_v26 = vpop.permute.xlu0 %1083  ;;  %v1184_v20 = vmul.f32 %v4998_v14, %v1089_v1 }
 0x153   :  { %v1183_v29 = vmul.f32 %v4998_v14, %v1084_v26 }
 0x154   :  { %v1216_v44 = vadd.f32 %v1184_v20, %v920_v30 }
 0x155   :  { %v1099_v46 = vpop.permute.xlu1 %1098  ;;  %v1215_v28 = vadd.f32 %v1183_v29, %v919_v42 }
 0x156   :  { %v1094_v2 = vpop.permute.xlu0 %1093  ;;  %v1186_v32 = vmul.f32 %v4998_v14, %v1099_v46 }
 0x157   :  { %v1185_v45 = vmul.f32 %v4998_v14, %v1094_v2 }
 0x158   :  { %v1218_v26 = vadd.f32 %v1186_v32, %v922_v25 }
 0x159   :  { %v1109_v47 = vpop.permute.xlu1 %1108  ;;  %v1217_v16 = vadd.f32 %v1185_v45, %v921_v48 }
 0x15a   :  { %v1104_v18 = vpop.permute.xlu0 %1103  ;;  %v1188_v46 = vmul.f32 %v4998_v14, %v1109_v47  ;;  %v893_v47 = vmul.f32 %v4981_v3, %v5419_v0 }
 0x15b   :  { %v1187_v6 = vmul.f32 %v4998_v14, %v1104_v18 }
 0x15c   :  { %v1220_v62 = vadd.f32 %v1188_v46, %v924_v5 }
 0x15d   :  { %v1119_v51 = vpop.permute.xlu1 %1118  ;;  %v1219_v60 = vadd.f32 %v1187_v6, %v923_v24 }
 0x15e   :  { %v1114_v15 = vpop.permute.xlu0 %1113  ;;  %v1190_v18 = vmul.f32 %v4998_v14, %v1119_v51  ;;  %v925_v51 = vadd.f32 %v893_v47, %v629_v21 }
 0x15f   :  { %v1189_v23 = vmul.f32 %v4998_v14, %v1114_v15 }
 0x160   :  { %v1222_v31 = vadd.f32 %v1190_v18, %v926_v9 }
 0x161   :  { %v1385_v43 = vpop.permute.xlu1 %1384  ;;  %v1221_v57 = vadd.f32 %v1189_v23, %v925_v51 }
 0x162   :  { %v1480_v50 = vmul.f32 %v5035_v22, %v1385_v43  ;;  %v1380_v37 = vpop.permute.xlu0 %1379 }
 0x163   :  { %v1479_v35 = vmul.f32 %v5035_v22, %v1380_v37 }
 0x164   :  { %v1512_v52 = vadd.f32 %v1480_v50, %v1216_v44 }
 0x165   :  { %v1511_v49 = vadd.f32 %v1479_v35, %v1215_v28  ;;  %v1395_v1 = vpop.permute.xlu1 %1394 }
 0x166   :  { %v1551_v4 = vadd.f32 %v5058_v59, %v1512_v52  ;;  %v1482_v2 = vmul.f32 %v5035_v22, %v1395_v1  ;;  %v1390_v10 = vpop.permute.xlu0 %1389 }
 0x167   :  { %v1550_v33 = vadd.f32 %v5058_v59, %v1511_v49  ;;  %v1481_v8 = vmul.f32 %v5035_v22, %v1390_v10 }
 0x168   :  { %v1583_v54 = vmax.f32 %v1551_v4, 0.0  ;;  %v1514_v17 = vadd.f32 %v1482_v2, %v1218_v26 }
 0x169   :  { %v1582_v11 = vmax.f32 %v1550_v33, 0.0  ;;  %v1513_v19 = vadd.f32 %v1481_v8, %v1217_v16  ;;  %v1405_v27 = vpop.permute.xlu1 %1404 }
 0x16a   :  { %1616 = vst.msk [vmem:[#allocation2 + $0x92] sm:$0xff] %vm1598_vm1, %v1583_v54  ;;  %v1553_v63 = vadd.f32 %v5058_v59, %v1514_v17  ;;  %v1484_v13 = vmul.f32 %v5035_v22, %v1405_v27  ;;  %v1400_v20 = vpop.permute.xlu0 %1399 }
 0x16b   :  { %1615 = vst.msk [vmem:[#allocation2 + $0x8a] sm:$0xff] %vm1598_vm1, %v1582_v11  ;;  %v1552_v3 = vadd.f32 %v5058_v59, %v1513_v19  ;;  %v1483_v0 = vmul.f32 %v5035_v22, %v1400_v20 }
 0x16c   :  { %v1585_v55 = vmax.f32 %v1553_v63, 0.0  ;;  %v1516_v29 = vadd.f32 %v1484_v13, %v1220_v62  ;;  %v4544_v13 = vld [vmem:[%s5760_s1 + $0x1] ss:$0 sm:$0xff] }
 0x16d   :  { %v1584_v7 = vmax.f32 %v1552_v3, 0.0  ;;  %v1515_v12 = vadd.f32 %v1483_v0, %v1219_v60  ;;  %v1415_v30 = vpop.permute.xlu1 %1414 }
 0x16e   :  { %1618 = vst.msk [vmem:[#allocation2 + $0xa2] sm:$0xff] %vm1598_vm1, %v1585_v55  ;;  %v1555_v39 = vadd.f32 %v5058_v59, %v1516_v29  ;;  %v1486_v14 = vmul.f32 %v5035_v22, %v1415_v30  ;;  %v1410_v15 = vpop.permute.xlu0 %1409  ;;  %v4545_v55 = vld [vmem:[%s5760_s1] ss:$0 sm:$0xff]  ;;  %v4546_v30 = vld [vmem:[%s5760_s1 + $0x2] ss:$0 sm:$0xff] }
 0x16f   :  { %1617 = vst.msk [vmem:[#allocation2 + $0x9a] sm:$0xff] %vm1598_vm1, %v1584_v7  ;;  %v1554_v42 = vadd.f32 %v5058_v59, %v1515_v12  ;;  %v1485_v40 = vmul.f32 %v5035_v22, %v1410_v15 }
 0x170   :  { %v1587_v43 = vmax.f32 %v1555_v39, 0.0  ;;  %v1518_v34 = vadd.f32 %v1486_v14, %v1222_v31 }
 0x171   :  { %v1586_v44 = vmax.f32 %v1554_v42, 0.0  ;;  %v1517_v32 = vadd.f32 %v1485_v40, %v1221_v57  ;;  %v241_v50 = vpop.permute.xlu1 %240 }
 0x172   :  { %1620 = vst.msk [vmem:[#allocation2 + $0xb2] sm:$0xff] %vm1598_vm1, %v1587_v43  ;;  %v1557_v37 = vadd.f32 %v5058_v59, %v1518_v34  ;;  %v236_v36 = vpop.permute.xlu0 %235  ;;  %v1689_v25 = vld [vmem:[#allocation2 + $0x89] ss:$2 sm:$0xff]  ;;  %v304_v29 = vmul.f32 %v4545_v55, %v241_v50  ;;  %v4547_v34 = vld [vmem:[%s5760_s1 + $0x3] ss:$0 sm:$0xff] }
 0x173   :  { %1619 = vst.msk [vmem:[#allocation2 + $0xaa] sm:$0xff] %vm1598_vm1, %v1586_v44  ;;  %v1556_v28 = vadd.f32 %v5058_v59, %v1517_v32  ;;  %v303_v51 = vmul.f32 %v4545_v55, %v236_v36 }
 0x174   :  { %v1589_v45 = vmax.f32 %v1557_v37, 0.0 }
 0x175   :  { %v1588_v35 = vmax.f32 %v1556_v28, 0.0  ;;  %v251_v61 = vpop.permute.xlu1 %250 }
 0x176   :  { %1622 = vst.msk [vmem:[#allocation2 + $0xc2] sm:$0xff] %vm1598_vm1, %v1589_v45  ;;  %v246_v22 = vpop.permute.xlu0 %245  ;;  %v1691_v58 = vld [vmem:[#allocation2 + $0x99] ss:$2 sm:$0xff]  ;;  %v306_v7 = vmul.f32 %v4545_v55, %v251_v61 }
 0x177   :  { %1621 = vst.msk [vmem:[#allocation2 + $0xba] sm:$0xff] %vm1598_vm1, %v1588_v35  ;;  %v1708_v52 = vpack.c.bf16 %v1691_v58, %v1689_v25  ;;  %v305_v12 = vmul.f32 %v4545_v55, %v246_v22 }
 0x179   :  { %4190 = vmatprep.mubr.msk.bf16.mxu0 %vm1598_vm1, %v1708_v52  ;;  %v537_v21 = vpop.permute.xlu1 %536 }
 0x17a   :  { %v532_v48 = vpop.permute.xlu0 %531  ;;  %v1693_v1 = vld [vmem:[#allocation2 + $0xa9] ss:$2 sm:$0xff]  ;;  %v600_v20 = vmul.f32 %v4544_v13, %v537_v21 }
 0x17b   :  { %v599_v60 = vmul.f32 %v4544_v13, %v532_v48 }
 0x17c   :  { %v632_v39 = vadd.f32 %v600_v20, %v304_v29  ;;  %v4549_v20 = vld [vmem:[%s5761_s2] ss:$0 sm:$0xff] }
 0x17d   :  { %v547_v53 = vpop.permute.xlu1 %546  ;;  %v631_v14 = vadd.f32 %v599_v60, %v303_v51 }
 0x17e   :  { %v542_v49 = vpop.permute.xlu0 %541  ;;  %v1695_v26 = vld [vmem:[#allocation2 + $0xb9] ss:$2 sm:$0xff]  ;;  %v602_v3 = vmul.f32 %v4544_v13, %v547_v53 }
 0x17f   :  { %v1709_v59 = vpack.c.bf16 %v1695_v26, %v1693_v1  ;;  %v601_v0 = vmul.f32 %v4544_v13, %v542_v49  ;;  %v4548_v26 = vld [vmem:[%s5760_s1 + $0x4] ss:$0 sm:$0xff] }
 0x180   :  { %v634_v42 = vadd.f32 %v602_v3, %v306_v7 }
 0x181   :  { %4191 = vmatmul.mubr.msk.bf16.gmra.mrb[8].mxu0 %vm1598_vm1, %v1709_v59  ;;  %v261_v46 = vpop.permute.xlu1 %260  ;;  %v633_v40 = vadd.f32 %v601_v0, %v305_v12 }
 0x182   :  { %v256_v4 = vpop.permute.xlu0 %255  ;;  %v308_v50 = vmul.f32 %v4545_v55, %v261_v46 }
 0x183   :  { %v307_v37 = vmul.f32 %v4545_v55, %v256_v4 }
 0x185   :  { %v271_v2 = vpop.permute.xlu1 %270 }
 0x186   :  { %v266_v10 = vpop.permute.xlu0 %265  ;;  %v310_v45 = vmul.f32 %v4545_v55, %v271_v2 }
 0x187   :  { %v309_v25 = vmul.f32 %v4545_v55, %v266_v10 }
 0x189   :  { %v557_v16 = vpop.permute.xlu1 %556 }
 0x18a   :  { %v552_v6 = vpop.permute.xlu0 %551  ;;  %v604_v43 = vmul.f32 %v4544_v13, %v557_v16 }
 0x18b   :  { %v603_v36 = vmul.f32 %v4544_v13, %v552_v6 }
 0x18c   :  { %v636_v53 = vadd.f32 %v604_v43, %v308_v50 }
 0x18d   :  { %v567_v33 = vpop.permute.xlu1 %566  ;;  %v635_v4 = vadd.f32 %v603_v36, %v307_v37 }
 0x18e   :  { %v562_v8 = vpop.permute.xlu0 %561  ;;  %v606_v35 = vmul.f32 %v4544_v13, %v567_v33 }
 0x18f   :  { %v605_v58 = vmul.f32 %v4544_v13, %v562_v8 }
 0x190   :  { %v638_v33 = vadd.f32 %v606_v35, %v310_v45 }
 0x191   :  { %v833_v5 = vpop.permute.xlu1 %832 }
 0x192   :  { %v828_v56 = vpop.permute.xlu0 %827  ;;  %v896_v31 = vmul.f32 %v4546_v30, %v833_v5 }
 0x193   :  { %v895_v15 = vmul.f32 %v4546_v30, %v828_v56  ;;  %v637_v56 = vadd.f32 %v605_v58, %v309_v25 }
 0x194   :  { %v928_v61 = vadd.f32 %v896_v31, %v632_v39 }
 0x195   :  { %v843_v54 = vpop.permute.xlu1 %842  ;;  %v927_v52 = vadd.f32 %v895_v15, %v631_v14 }
 0x196   :  { %v838_v17 = vpop.permute.xlu0 %837  ;;  %v898_v22 = vmul.f32 %v4546_v30, %v843_v54 }
 0x197   :  { %v897_v21 = vmul.f32 %v4546_v30, %v838_v17 }
 0x198   :  { %v930_v5 = vadd.f32 %v898_v22, %v634_v42 }
 0x199   :  { %v853_v24 = vpop.permute.xlu1 %852  ;;  %v929_v54 = vadd.f32 %v897_v21, %v633_v40 }
 0x19a   :  { %v848_v47 = vpop.permute.xlu0 %847  ;;  %v900_v10 = vmul.f32 %v4546_v30, %v853_v24 }
 0x19b   :  { %v899_v17 = vmul.f32 %v4546_v30, %v848_v47 }
 0x19c   :  { %v932_v24 = vadd.f32 %v900_v10, %v636_v53 }
 0x19d   :  { %v5491_v11 = vpop.permute.xlu1 %862  ;;  %v931_v31 = vadd.f32 %v899_v17, %v635_v4  ;;  %v1637_v17 = vld [vmem:[#allocation2 + $0x30] ss:$2 sm:$0xff] }
 0x19e   :  { %v5493_v19 = vpop.permute.xlu0 %857  ;;  %v902_v7 = vmul.f32 %v4546_v30, %v5491_v11 }
 0x19f   :  { %v901_v39 = vmul.f32 %v4546_v30, %v5493_v19 }
 0x1a1   :  { %v1129_v27 = vpop.permute.xlu1 %1128  ;;  %v933_v19 = vadd.f32 %v901_v39, %v637_v56  ;;  %v1631_v56 = vld [vmem:[#allocation2] ss:$2 sm:$0xff] }
 0x1a2   :  { %v1124_v62 = vpop.permute.xlu0 %1123  ;;  %v1192_v44 = vmul.f32 %v4547_v34, %v1129_v27 }
 0x1a3   :  { %v1191_v28 = vmul.f32 %v4547_v34, %v1124_v62 }
 0x1a4   :  { %v1224_v49 = vadd.f32 %v1192_v44, %v928_v61 }
 0x1a5   :  { %v1139_v18 = vpop.permute.xlu1 %1138  ;;  %v1223_v16 = vadd.f32 %v1191_v28, %v927_v52  ;;  %v934_v28 = vadd.f32 %v902_v7, %v638_v33 }
 0x1a6   :  { %v1134_v63 = vpop.permute.xlu0 %1133  ;;  %v1194_v1 = vmul.f32 %v4547_v34, %v1139_v18 }
 0x1a7   :  { %v1193_v2 = vmul.f32 %v4547_v34, %v1134_v63 }
 0x1a8   :  { %v1226_v18 = vadd.f32 %v1194_v1, %v930_v5 }
 0x1a9   :  { %v1149_v23 = vpop.permute.xlu1 %1148  ;;  %v1225_v63 = vadd.f32 %v1193_v2, %v929_v54 }
 0x1aa   :  { %v1144_v9 = vpop.permute.xlu0 %1143  ;;  %v1196_v13 = vmul.f32 %v4547_v34, %v1149_v23 }
 0x1ab   :  { %v1195_v55 = vmul.f32 %v4547_v34, %v1144_v9 }
 0x1ac   :  { %v1228_v42 = vadd.f32 %v1196_v13, %v932_v24  ;;  %v1639_v13 = vld [vmem:[#allocation2 + $0x40] ss:$2 sm:$0xff] }
 0x1ad   :  { %v1159_v57 = vpop.permute.xlu1 %1158  ;;  %v1227_v50 = vadd.f32 %v1195_v55, %v931_v31  ;;  %v1653_v24 = vld [vmem:[#allocation2 + $0xb8] ss:$2 sm:$0xff] }
 0x1ae   :  { %v1154_v32 = vpop.permute.xlu0 %1153  ;;  %v1198_v40 = vmul.f32 %v4547_v34, %v1159_v57 }
 0x1af   :  { %v1197_v37 = vmul.f32 %v4547_v34, %v1154_v32 }
 0x1b0   :  { %v1230_v25 = vadd.f32 %v1198_v40, %v934_v28  ;;  %v1984_v28 = vld [vmem:[#allocation2 + $0x72] ss:$2 sm:$0xff] }
 0x1b1   :  { %v1425_v48 = vpop.permute.xlu1 %1424  ;;  %v1229_v21 = vadd.f32 %v1197_v37, %v933_v19  ;;  %v1978_v37 = vld [vmem:[#allocation2 + $0x42] ss:$2 sm:$0xff] }
 0x1b2   :  { %v1488_v59 = vmul.f32 %v4548_v26, %v1425_v48  ;;  %v1420_v46 = vpop.permute.xlu0 %1419 }
 0x1b3   :  { %v1487_v6 = vmul.f32 %v4548_v26, %v1420_v46 }
 0x1b4   :  { %v1520_v8 = vadd.f32 %v1488_v59, %v1224_v49 }
 0x1b5   :  { %v1519_v27 = vadd.f32 %v1487_v6, %v1223_v16  ;;  %v1435_v62 = vpop.permute.xlu1 %1434 }
 0x1b6   :  { %v1559_v60 = vadd.f32 %v4549_v20, %v1520_v8  ;;  %v1490_v3 = vmul.f32 %v4548_v26, %v1435_v62  ;;  %v1430_v0 = vpop.permute.xlu0 %1429  ;;  %v1635_v62 = vld [vmem:[#allocation2 + $0x20] ss:$2 sm:$0xff] }
 0x1b7   :  { %v1558_v29 = vadd.f32 %v4549_v20, %v1519_v27  ;;  %v1489_v51 = vmul.f32 %v4548_v26, %v1430_v0  ;;  %v1641_v27 = vld [vmem:[#allocation2 + $0x50] ss:$2 sm:$0xff] }
 0x1b8   :  { %v1591_v12 = vmax.f32 %v1559_v60, 0.0  ;;  %v1522_v47 = vadd.f32 %v1490_v3, %v1226_v18  ;;  %v1663_v18 = vpack.c.bf16 %v1637_v17, %v1635_v62  ;;  %v1664_v60 = vpack.c.bf16 %v1641_v27, %v1639_v13  ;;  %v1645_v3 = vld [vmem:[#allocation2 + $0x70] ss:$2 sm:$0xff]  ;;  %v2176_v27 = vld [vmem:[#allocation2 + $0xab] ss:$2 sm:$0xff] }
 0x1b9   :  { %v1590_v23 = vmax.f32 %v1558_v29, 0.0  ;;  %v1521_v14 = vadd.f32 %v1489_v51, %v1225_v63  ;;  %v1445_v15 = vpop.permute.xlu1 %1444  ;;  %v1649_v0 = vld [vmem:[#allocation2 + $0x98] ss:$2 sm:$0xff]  ;;  %v1647_v29 = vld [vmem:[#allocation2 + $0x88] ss:$2 sm:$0xff] }
 0x1ba   :  { %1624 = vst.msk [vmem:[#allocation2 + $0xd2] sm:$0xff] %vm1598_vm1, %v1591_v12  ;;  %v1561_v43 = vadd.f32 %v4549_v20, %v1522_v47  ;;  %v1492_v44 = vmul.f32 %v4548_v26, %v1445_v15  ;;  %v1440_v9 = vpop.permute.xlu0 %1439  ;;  %v1643_v63 = vld [vmem:[#allocation2 + $0x60] ss:$2 sm:$0xff]  ;;  %v1666_v51 = vpack.c.bf16 %v1649_v0, %v1647_v29 }
 0x1bb   :  { %1623 = vst.msk [vmem:[#allocation2 + $0xca] sm:$0xff] %vm1598_vm1, %v1590_v23  ;;  %v1560_v11 = vadd.f32 %v4549_v20, %v1521_v14  ;;  %v1491_v36 = vmul.f32 %v4548_v26, %v1440_v9  ;;  %v1665_v55 = vpack.c.bf16 %v1645_v3, %v1643_v63  ;;  %v1651_v12 = vld [vmem:[#allocation2 + $0xa8] ss:$2 sm:$0xff] }
 0x1bc   :  { %v1593_v45 = vmax.f32 %v1561_v43, 0.0  ;;  %v1524_v35 = vadd.f32 %v1492_v44, %v1228_v42  ;;  %v1667_v47 = vpack.c.bf16 %v1653_v24, %v1651_v12  ;;  %v1972_v23 = vld [vmem:[#allocation2 + $0x12] ss:$2 sm:$0xff]  ;;  %v1970_v42 = vld [vmem:[#allocation2 + $0x2] ss:$2 sm:$0xff] }
 0x1bd   :  { %v1592_v30 = vmax.f32 %v1560_v11, 0.0  ;;  %v1523_v61 = vadd.f32 %v1491_v36, %v1227_v50  ;;  %v1455_v22 = vpop.permute.xlu1 %1454  ;;  %v2001_v40 = vpack.c.bf16 %v1972_v23, %v1970_v42  ;;  %v1976_v43 = vld [vmem:[#allocation2 + $0x32] ss:$2 sm:$0xff]  ;;  %v1974_v9 = vld [vmem:[#allocation2 + $0x22] ss:$2 sm:$0xff] }
 0x1be   :  { %1626 = vst.msk [vmem:[#allocation2 + $0xe2] sm:$0xff] %vm1598_vm1, %v1593_v45  ;;  %v1563_v57 = vadd.f32 %v4549_v20, %v1524_v35  ;;  %v1494_v58 = vmul.f32 %v4548_v26, %v1455_v22  ;;  %v1450_v52 = vpop.permute.xlu0 %1449  ;;  %v1980_v44 = vld [vmem:[#allocation2 + $0x52] ss:$2 sm:$0xff]  ;;  %v2002_v50 = vpack.c.bf16 %v1976_v43, %v1974_v9  ;;  %v1982_v35 = vld [vmem:[#allocation2 + $0x62] ss:$2 sm:$0xff] }
 0x1bf   :  { %1625 = vst.msk [vmem:[#allocation2 + $0xda] sm:$0xff] %vm1598_vm1, %v1592_v30  ;;  %v1562_v34 = vadd.f32 %v4549_v20, %v1523_v61  ;;  %v1493_v32 = vmul.f32 %v4548_v26, %v1450_v52  ;;  %v1633_v26 = vld [vmem:[#allocation2 + $0x10] ss:$2 sm:$0xff]  ;;  %v4513_v11 = vld [vmem:[%s5762_s3 + $0x20] sm:$0xff]   ;;  %v2003_v36 = vpack.c.bf16 %v1980_v44, %v1978_v37  ;;  %v2004_v19 = vpack.c.bf16 %v1984_v28, %v1982_v35 }
 0x1c0   :  { %v1595_v48 = vmax.f32 %v1563_v57, 0.0  ;;  %v1526_v53 = vadd.f32 %v1494_v58, %v1230_v25  ;;  %v1662_v54 = vpack.c.bf16 %v1633_v26, %v1631_v56  ;;  %v1988_v45 = vld [vmem:[#allocation2 + $0x9a] ss:$2 sm:$0xff]  ;;  %v1986_v30 = vld [vmem:[#allocation2 + $0x8a] ss:$2 sm:$0xff] }
 0x1c1   :  { %v1594_v49 = vmax.f32 %v1562_v34, 0.0  ;;  %v1525_v1 = vadd.f32 %v1493_v32, %v1229_v21  ;;  %v2005_v61 = vpack.c.bf16 %v1988_v45, %v1986_v30  ;;  %v1992_v22 = vld [vmem:[#allocation2 + $0xba] ss:$2 sm:$0xff]  ;;  %v1990_v57 = vld [vmem:[#allocation2 + $0xaa] ss:$2 sm:$0xff] }
 0x1c2   :  { %1628 = vst.msk [vmem:[#allocation2 + $0xf2] sm:$0xff] %vm1598_vm1, %v1595_v48  ;;  %v1565_v59 = vadd.f32 %v4549_v20, %v1526_v53  ;;  %v1697_v2 = vld [vmem:[#allocation2 + $0xc9] ss:$2 sm:$0xff]  ;;  %v1655_v31 = vld [vmem:[#allocation2 + $0xc8] ss:$2 sm:$0xff]  ;;  %v2006_v58 = vpack.c.bf16 %v1992_v22, %v1990_v57  ;;  %v4515_v45 = vld [vmem:[%s5764_s5 + $0x18] sm:$0xff]  }
 0x1c3   :  { %1627 = vst.msk [vmem:[#allocation2 + $0xea] sm:$0xff] %vm1598_vm1, %v1594_v49  ;;  %v1564_v46 = vadd.f32 %v4549_v20, %v1525_v1  ;;  %v4512_v20 = vld [vmem:[%s5762_s3 + $0x18] sm:$0xff]   ;;  %v2156_v49 = vld [vmem:[#allocation2 + $0x3] ss:$2 sm:$0xff]  ;;  %v2342_v63 = vld [vmem:[#allocation2 + $0x4] ss:$2 sm:$0xff] }
 0x1c4   :  { %v1597_v4 = vmax.f32 %v1565_v59, 0.0  ;;  %v1994_v52 = vld [vmem:[#allocation2 + $0xca] ss:$2 sm:$0xff]  ;;  %v2158_v32 = vld [vmem:[#allocation2 + $0x13] ss:$2 sm:$0xff] }
 0x1c5   :  { %v1596_v16 = vmax.f32 %v1564_v46, 0.0  ;;  %v2187_v1 = vpack.c.bf16 %v2158_v32, %v2156_v49  ;;  %v2162_v59 = vld [vmem:[#allocation2 + $0x33] ss:$2 sm:$0xff]  ;;  %v2348_v29 = vld [vmem:[#allocation2 + $0x34] ss:$2 sm:$0xff] }
 0x1c6   :  { %1630 = vst.msk [vmem:[#allocation2 + $0x102] sm:$0xff] %vm1598_vm1, %v1597_v4  ;;  %v1699_v6 = vld [vmem:[#allocation2 + $0xd9] ss:$2 sm:$0xff]  ;;  %v1657_v7 = vld [vmem:[#allocation2 + $0xd8] ss:$2 sm:$0xff]  ;;  %v4514_v28 = vld [vmem:[%s5764_s5 + $0x10] sm:$0xff]  }
 0x1c7   :  { %1629 = vst.msk [vmem:[#allocation2 + $0xfa] sm:$0xff] %vm1598_vm1, %v1596_v16  ;;  %v1710_v33 = vpack.c.bf16 %v1699_v6, %v1697_v2  ;;  %v1668_v39 = vpack.c.bf16 %v1657_v7, %v1655_v31  ;;  %v1996_v25 = vld [vmem:[#allocation2 + $0xda] ss:$2 sm:$0xff]  ;;  %v2166_v46 = vld [vmem:[#allocation2 + $0x53] ss:$2 sm:$0xff]  ;;  %4270 = vmatprep.subr.bf16.mxu1 %v4514_v28 }
 0x1c8   :  { %v2007_v21 = vpack.c.bf16 %v1996_v25, %v1994_v52  ;;  %v2160_v4 = vld [vmem:[#allocation2 + $0x23] ss:$2 sm:$0xff]  ;;  %v2346_v24 = vld [vmem:[#allocation2 + $0x24] ss:$2 sm:$0xff]  ;;  %4271 = vmatpush3.bf16.msra.mxu1 %v4514_v28 }
 0x1c9   :  { %4194 = vmatprep.mubr.msk.bf16.mxu0 %vm1598_vm1, %v1710_v33  ;;  %v2188_v16 = vpack.c.bf16 %v2162_v59, %v2160_v4  ;;  %v2164_v2 = vld [vmem:[#allocation2 + $0x43] ss:$2 sm:$0xff]  ;;  %v2170_v33 = vld [vmem:[#allocation2 + $0x73] ss:$2 sm:$0xff]  ;;  %v2374_v7 = vpack.c.bf16 %v2348_v29, %v2346_v24  ;;  %v2350_v12 = vld [vmem:[#allocation2 + $0x44] ss:$2 sm:$0xff]  ;;  %4272 = vmatprep.subr.bf16.mxu1 %v4515_v45 }
 0x1ca   :  { %v1701_v5 = vld [vmem:[#allocation2 + $0xe9] ss:$2 sm:$0xff]  ;;  %v1659_v14 = vld [vmem:[#allocation2 + $0xe8] ss:$2 sm:$0xff]  ;;  %v2189_v6 = vpack.c.bf16 %v2166_v46, %v2164_v2  ;;  %v5577_v35 = vld [vmem:[%s5764_s5] sm:$0xff]  }
 0x1cb   :  { %v1998_v48 = vld [vmem:[#allocation2 + $0xea] ss:$2 sm:$0xff]  ;;  %v2174_v26 = vld [vmem:[#allocation2 + $0x9b] ss:$2 sm:$0xff]  ;;  %v2184_v3 = vld [vmem:[#allocation2 + $0xeb] ss:$2 sm:$0xff] }
 0x1cc   :  { %v2182_v17 = vld [vmem:[#allocation2 + $0xdb] ss:$2 sm:$0xff]  ;;  %v2354_v31 = vld [vmem:[#allocation2 + $0x64] ss:$2 sm:$0xff]  ;;  %4273 = vmatpush3.bf16.msra.mxu1 %v4515_v45 }
 0x1cd   :  { %v2364_v42 = vld [vmem:[#allocation2 + $0xbc] ss:$2 sm:$0xff]  ;;  %v2362_v43 = vld [vmem:[#allocation2 + $0xac] ss:$2 sm:$0xff]  ;;  %4282 = vmatprep.subr.bf16.mxu1 %v5577_v35 }
 0x1ce   :  { %v1703_v10 = vld [vmem:[#allocation2 + $0xf9] ss:$2 sm:$0xff]  ;;  %v2000_v34 = vld [vmem:[#allocation2 + $0xfa] ss:$2 sm:$0xff]  ;;  %v2378_v44 = vpack.c.bf16 %v2364_v42, %v2362_v43 }
 0x1cf   :  { %v1711_v8 = vpack.c.bf16 %v1703_v10, %v1701_v5  ;;  %v2008_v53 = vpack.c.bf16 %v2000_v34, %v1998_v48  ;;  %v2168_v5 = vld [vmem:[#allocation2 + $0x63] ss:$2 sm:$0xff]  ;;  %v2366_v9 = vld [vmem:[#allocation2 + $0xcc] ss:$2 sm:$0xff] }
 0x1d0   :  { %v2190_v10 = vpack.c.bf16 %v2170_v33, %v2168_v5  ;;  %v2370_v37 = vld [vmem:[#allocation2 + $0xec] ss:$2 sm:$0xff] }
 0x1d1   :  { %4195 = vmatmul.mubr.msk.bf16.gmra.mrb[12].mxu0 %vm1598_vm1, %v1711_v8  ;;  %v2172_v8 = vld [vmem:[#allocation2 + $0x8b] ss:$2 sm:$0xff] }
 0x1d2   :  { %4200 = vmatprep.mubr.msk.bf16.mxu0 %vm1598_vm1, %v1662_v54  ;;  %v2191_v56 = vpack.c.bf16 %v2174_v26, %v2172_v8  ;;  %v2178_v54 = vld [vmem:[#allocation2 + $0xbb] ss:$2 sm:$0xff] }
 0x1d3   :  { %v2192_v62 = vpack.c.bf16 %v2178_v54, %v2176_v27 }
 0x1d9   :  { %4201 = vmatmul.mubr.msk.bf16.vlgmr.msra.gmra.mrb[0].mxu0 %vm1598_vm1, %v1663_v18  ;;  %v2180_v18 = vld [vmem:[#allocation2 + $0xcb] ss:$2 sm:$0xff] }
 0x1da   :  { %4217 = vmatpush3.bf16.msra.mxu0 %v5424_v38  ;;  %4204 = vmatprep.mubr.msk.bf16.mxu0 %vm1598_vm1, %v1664_v60  ;;  %v1661_v38 = vld [vmem:[#allocation2 + $0xf8] ss:$2 sm:$0xff]  ;;  %v2193_v13 = vpack.c.bf16 %v2182_v17, %v2180_v18 }
 0x1db   :  { %4234 = vmatprep.subr.bf16.mxu0 %v4512_v20  ;;  %v1669_v15 = vpack.c.bf16 %v1661_v38, %v1659_v14  ;;  %v2344_v60 = vld [vmem:[#allocation2 + $0x14] ss:$2 sm:$0xff] }
 0x1dc   :  { %v2360_v38 = vld [vmem:[#allocation2 + $0x9c] ss:$2 sm:$0xff]  ;;  %v2358_v14 = vld [vmem:[#allocation2 + $0x8c] ss:$2 sm:$0xff] }
 0x1e1   :  { %4205 = vmatmul.mubr.msk.bf16.gmra.mrb[4].mxu0 %vm1598_vm1, %v1665_v55  ;;  %v2373_v55 = vpack.c.bf16 %v2344_v60, %v2342_v63 }
 0x1e2   :  { %4208 = vmatprep.mubr.msk.bf16.mxu0 %vm1598_vm1, %v1666_v51  ;;  %v2352_v51 = vld [vmem:[#allocation2 + $0x54] ss:$2 sm:$0xff] }
 0x1e9   :  { %4209 = vmatmul.mubr.msk.bf16.gmra.mrb[8].mxu0 %vm1598_vm1, %v1667_v47  ;;  %v2375_v47 = vpack.c.bf16 %v2352_v51, %v2350_v12 }
 0x1ea   :  { %4212 = vmatprep.mubr.msk.bf16.mxu0 %vm1598_vm1, %v1668_v39  ;;  %v2356_v39 = vld [vmem:[#allocation2 + $0x74] ss:$2 sm:$0xff] }
 0x1eb   :  { %v2376_v23 = vpack.c.bf16 %v2356_v39, %v2354_v31 }
 0x1f1   :  { %4213 = vmatmul.mubr.msk.bf16.gmra.mrb[12].mxu0 %vm1598_vm1, %v1669_v15  ;;  %v2377_v15 = vpack.c.bf16 %v2360_v38, %v2358_v14 }
 0x1f2   :  { %4218 = vmatprep.mubr.msk.bf16.mxu0 %vm1598_vm1, %v2001_v40  ;;  %v2368_v40 = vld [vmem:[#allocation2 + $0xdc] ss:$2 sm:$0xff] }
 0x1f9   :  { %4219 = vmatmul.mubr.msk.bf16.vlgmr.msra.gmra.mrb[0].mxu0 %vm1598_vm1, %v2002_v50  ;;  %v2379_v50 = vpack.c.bf16 %v2368_v40, %v2366_v9 }
 0x1fa   :  { %4235 = vmatpush3.bf16.msra.mxu0 %v4512_v20  ;;  %4222 = vmatprep.mubr.msk.bf16.mxu0 %vm1598_vm1, %v2003_v36  ;;  %v2186_v20 = vld [vmem:[#allocation2 + $0xfb] ss:$2 sm:$0xff] }
 0x1fb   :  { %4252 = vmatprep.subr.bf16.mxu0 %v4513_v11  ;;  %v2194_v0 = vpack.c.bf16 %v2186_v20, %v2184_v3 }
 0x201   :  { %4223 = vmatmul.mubr.msk.bf16.gmra.mrb[4].mxu0 %vm1598_vm1, %v2004_v19  ;;  %v5583_v19 = vld [vmem:[%s5763_s4] ss:$0 sm:$0xff] }
 0x202   :  { %4226 = vmatprep.mubr.msk.bf16.mxu0 %vm1598_vm1, %v2005_v61 }
 0x209   :  { %4227 = vmatmul.mubr.msk.bf16.gmra.mrb[8].mxu0 %vm1598_vm1, %v2006_v58 }
 0x20a   :  { %4230 = vmatprep.mubr.msk.bf16.mxu0 %vm1598_vm1, %v2007_v21 }
 0x211   :  { %4231 = vmatmul.mubr.msk.bf16.gmra.mrb[12].mxu0 %vm1598_vm1, %v2008_v53 }
 0x212   :  { %4236 = vmatprep.mubr.msk.bf16.mxu0 %vm1598_vm1, %v2187_v1 }
 0x219   :  { %4237 = vmatmul.mubr.msk.bf16.vlgmr.msra.gmra.mrb[0].mxu0 %vm1598_vm1, %v2188_v16 }
 0x21a   :  { %4253 = vmatpush3.bf16.msra.mxu0 %v4513_v11  ;;  %4240 = vmatprep.mubr.msk.bf16.mxu0 %vm1598_vm1, %v2189_v6  ;;  %v2372_v11 = vld [vmem:[#allocation2 + $0xfc] ss:$2 sm:$0xff] }
 0x21b   :  { %v2380_v36 = vpack.c.bf16 %v2372_v11, %v2370_v37 }
 0x221   :  { %4241 = vmatmul.mubr.msk.bf16.gmra.mrb[4].mxu0 %vm1598_vm1, %v2190_v10 }
 0x222   :  { %4244 = vmatprep.mubr.msk.bf16.mxu0 %vm1598_vm1, %v2191_v56 }
 0x229   :  { %4245 = vmatmul.mubr.msk.bf16.gmra.mrb[8].mxu0 %vm1598_vm1, %v2192_v62 }
 0x22a   :  { %4248 = vmatprep.mubr.msk.bf16.mxu0 %vm1598_vm1, %v2193_v13 }
 0x231   :  { %4249 = vmatmul.mubr.msk.bf16.gmra.mrb[12].mxu0 %vm1598_vm1, %v2194_v0 }
 0x232   :  { %4254 = vmatprep.mubr.msk.bf16.mxu0 %vm1598_vm1, %v2373_v55 }
 0x239   :  { %4255 = vmatmul.mubr.msk.bf16.vlgmr.msra.gmra.mrb[0].mxu0 %vm1598_vm1, %v2374_v7 }
 0x23a   :  { %4258 = vmatprep.mubr.msk.bf16.mxu0 %vm1598_vm1, %v2375_v47  ;;  %v4517_v47 = vld [vmem:[%s5764_s5 + $0x8] sm:$0xff]  }
 0x241   :  { %4259 = vmatmul.mubr.msk.bf16.gmra.mrb[4].mxu0 %vm1598_vm1, %v2376_v23 }
 0x242   :  { %4262 = vmatprep.mubr.msk.bf16.mxu0 %vm1598_vm1, %v2377_v15 }
 0x249   :  { %4263 = vmatmul.mubr.msk.bf16.gmra.mrb[8].mxu0 %vm1598_vm1, %v2378_v44  ;;  %v4518_v44 = vld [vmem:[%s5764_s5 + $0x20] sm:$0xff]  }
 0x24a   :  { %4266 = vmatprep.mubr.msk.bf16.mxu0 %vm1598_vm1, %v2379_v50 }
 0x251   :  { %4267 = vmatmul.mubr.msk.bf16.gmra.mrb[12].mxu0 %vm1598_vm1, %v2380_v36 }
 0x30c   :  { %v4256_v30 = vpop.f32.mrb[0].mxu0 }
 0x30d   :  { %v2536_v61 = vadd.f32 %v4256_v30, %v5583_v19  ;;  %v2448_v22 = vpop.f32.mrb[1].mxu0 }
 0x30e   :  { %v2534_v25 = vadd.f32 %v5583_v19, %v2448_v22  ;;  %v4257_v57 = vpop.f32.mrb[2].mxu0 }
 0x30f   :  { %v2552_v58 = vmax.f32 %v2536_v61, 0.0  ;;  %v2537_v52 = vadd.f32 %v4257_v57, %v5583_v19  ;;  %v2451_v21 = vpop.f32.mrb[3].mxu0 }
 0x310   :  { %v2550_v34 = vmax.f32 %v2534_v25, 0.0  ;;  %v2535_v32 = vadd.f32 %v5583_v19, %v2451_v21  ;;  %v4519_v21 = vld [vmem:[%s5764_s5 + $0x28] sm:$0xff]  }
 0x311   :  { %2569 = vst.msk [vmem:[#allocation3 + $0x12] sm:$0xff] %vm2566_vm3, %v2552_v58  ;;  %v2553_v48 = vmax.f32 %v2537_v52, 0.0 }
 0x312   :  { %2567 = vst.msk [vmem:[#allocation3 + $0x2] sm:$0xff] %vm2566_vm3, %v2550_v34  ;;  %v2551_v53 = vmax.f32 %v2535_v32, 0.0  ;;  %v4520_v32 = vld [vmem:[%s5764_s5 + $0x30] sm:$0xff]  }
 0x313   :  { %2570 = vst.msk [vmem:[#allocation3 + $0x1a] sm:$0xff] %vm2566_vm3, %v2553_v48 }
 0x314   :  { %2568 = vst.msk [vmem:[#allocation3 + $0xa] sm:$0xff] %vm2566_vm3, %v2551_v53  ;;  %v4260_v49 = vpop.f32.mrb[4].mxu0 }
 0x315   :  { %v2540_v1 = vadd.f32 %v4260_v49, %v5583_v19  ;;  %v2464_v59 = vpop.f32.mrb[5].mxu0 }
 0x316   :  { %v2538_v46 = vadd.f32 %v5583_v19, %v2464_v59  ;;  %v4261_v4 = vpop.f32.mrb[6].mxu0 }
 0x317   :  { %v2556_v16 = vmax.f32 %v2540_v1, 0.0  ;;  %v2541_v2 = vadd.f32 %v4261_v4, %v5583_v19  ;;  %v2467_v6 = vpop.f32.mrb[7].mxu0 }
 0x318   :  { %v2554_v33 = vmax.f32 %v2538_v46, 0.0  ;;  %v2539_v26 = vadd.f32 %v5583_v19, %v2467_v6 }
 0x319   :  { %2573 = vst.msk [vmem:[#allocation3 + $0x32] sm:$0xff] %vm2566_vm3, %v2556_v16  ;;  %v2557_v5 = vmax.f32 %v2541_v2, 0.0 }
 0x31a   :  { %2571 = vst.msk [vmem:[#allocation3 + $0x22] sm:$0xff] %vm2566_vm3, %v2554_v33  ;;  %v2555_v10 = vmax.f32 %v2539_v26, 0.0  ;;  %v2812_v1 = vld [vmem:[#allocation3 + $0x12] ss:$2 sm:$0xff]  ;;  %v4521_v26 = vld [vmem:[%s5764_s5 + $0x38] sm:$0xff]  }
 0x31b   :  { %2574 = vst.msk [vmem:[#allocation3 + $0x3a] sm:$0xff] %vm2566_vm3, %v2557_v5  ;;  %v2607_v8 = vld [vmem:[#allocation3 + $0x1] ss:$2 sm:$0xff]  ;;  %v2609_v56 = vld [vmem:[#allocation3 + $0x11] ss:$2 sm:$0xff] }
 0x31c   :  { %2572 = vst.msk [vmem:[#allocation3 + $0x2a] sm:$0xff] %vm2566_vm3, %v2555_v10  ;;  %v4264_v54 = vpop.f32.mrb[8].mxu0  ;;  %v2622_v17 = vpack.c.bf16 %v2609_v56, %v2607_v8  ;;  %v2583_v28 = vld [vmem:[#allocation3] ss:$2 sm:$0xff]  ;;  %v2585_v45 = vld [vmem:[#allocation3 + $0x10] ss:$2 sm:$0xff] }
 0x31d   :  { %v2544_v27 = vadd.f32 %v4264_v54, %v5583_v19  ;;  %v2480_v62 = vpop.f32.mrb[9].mxu0  ;;  %v2598_v61 = vpack.c.bf16 %v2585_v45, %v2583_v28  ;;  %v2810_v49 = vld [vmem:[#allocation3 + $0x2] ss:$2 sm:$0xff]  ;;  %v2932_v54 = vld [vmem:[#allocation3 + $0x3] ss:$2 sm:$0xff] }
 0x31e   :  { %v2542_v18 = vadd.f32 %v5583_v19, %v2480_v62  ;;  %v4265_v13 = vpop.f32.mrb[10].mxu0  ;;  %4274 = vmatprep.mubr.msk.bf16.mxu1 %vm2566_vm3, %v2622_v17  ;;  %v2825_v46 = vpack.c.bf16 %v2812_v1, %v2810_v49  ;;  %v4522_v10 = vld [vmem:[%s5764_s5 + $0x40] sm:$0xff]  }
 0x31f   :  { %v2560_v20 = vmax.f32 %v2544_v27, 0.0  ;;  %v2545_v60 = vadd.f32 %v4265_v13, %v5583_v19  ;;  %v2483_v3 = vpop.f32.mrb[11].mxu0  ;;  %v2934_v17 = vld [vmem:[#allocation3 + $0x13] ss:$2 sm:$0xff] }
 0x320   :  { %v2558_v0 = vmax.f32 %v2542_v18, 0.0  ;;  %v2543_v63 = vadd.f32 %v5583_v19, %v2483_v3  ;;  %v2947_v62 = vpack.c.bf16 %v2934_v17, %v2932_v54  ;;  %v4529_v54 = vld [vmem:[%s5766_s7 + $0x8] sm:$0xff]  }
 0x321   :  { %2577 = vst.msk [vmem:[#allocation3 + $0x5a] sm:$0xff] %vm2566_vm3, %v2560_v20  ;;  %v2561_v55 = vmax.f32 %v2545_v60, 0.0 }
 0x322   :  { %2575 = vst.msk [vmem:[#allocation3 + $0x4a] sm:$0xff] %vm2566_vm3, %v2558_v0  ;;  %v2559_v29 = vmax.f32 %v2543_v63, 0.0  ;;  %v2816_v16 = vld [vmem:[#allocation3 + $0x32] ss:$2 sm:$0xff]  ;;  %v2938_v13 = vld [vmem:[#allocation3 + $0x33] ss:$2 sm:$0xff] }
 0x323   :  { %2578 = vst.msk [vmem:[#allocation3 + $0x62] sm:$0xff] %vm2566_vm3, %v2561_v55  ;;  %v2611_v51 = vld [vmem:[#allocation3 + $0x21] ss:$2 sm:$0xff]  ;;  %v2613_v24 = vld [vmem:[#allocation3 + $0x31] ss:$2 sm:$0xff] }
 0x324   :  { %2576 = vst.msk [vmem:[#allocation3 + $0x52] sm:$0xff] %vm2566_vm3, %v2559_v29  ;;  %v4268_v7 = vpop.f32.mrb[12].mxu0  ;;  %v2623_v12 = vpack.c.bf16 %v2613_v24, %v2611_v51  ;;  %v2587_v22 = vld [vmem:[#allocation3 + $0x20] ss:$2 sm:$0xff]  ;;  %v2589_v25 = vld [vmem:[#allocation3 + $0x30] ss:$2 sm:$0xff] }
 0x325   :  { %v2548_v31 = vadd.f32 %v4268_v7, %v5583_v19  ;;  %v2496_v39 = vpop.f32.mrb[13].mxu0  ;;  %v2599_v52 = vpack.c.bf16 %v2589_v25, %v2587_v22  ;;  %v2814_v4 = vld [vmem:[#allocation3 + $0x22] ss:$2 sm:$0xff]  ;;  %v2936_v18 = vld [vmem:[#allocation3 + $0x23] ss:$2 sm:$0xff]  ;;  %v4523_v0 = vld [vmem:[%s5764_s5 + $0x48] sm:$0xff]  }
 0x326   :  { %v2546_v38 = vadd.f32 %v5583_v19, %v2496_v39  ;;  %v4269_v23 = vpop.f32.mrb[14].mxu0  ;;  %4275 = vmatmul.mubr.msk.bf16.vlgmr.msra.gmra.mrb[0].mxu1 %vm2566_vm3, %v2623_v12  ;;  %v2826_v33 = vpack.c.bf16 %v2816_v16, %v2814_v4  ;;  %v2948_v3 = vpack.c.bf16 %v2938_v13, %v2936_v18  ;;  %v3056_v51 = vld [vmem:[#allocation3 + $0x14] ss:$2 sm:$0xff]  ;;  %v3054_v7 = vld [vmem:[#allocation3 + $0x4] ss:$2 sm:$0xff] }
 0x327   :  { %v2564_v14 = vmax.f32 %v2548_v31, 0.0  ;;  %v2549_v15 = vadd.f32 %v4269_v23, %v5583_v19  ;;  %v2499_v42 = vpop.f32.mrb[15].mxu0  ;;  %4283 = vmatpush3.bf16.msra.mxu1 %v5577_v35  ;;  %v3069_v12 = vpack.c.bf16 %v3056_v51, %v3054_v7  ;;  %v3060_v31 = vld [vmem:[#allocation3 + $0x34] ss:$2 sm:$0xff]  ;;  %v4535_v51 = vld [vmem:[%s5766_s7 + $0x58] sm:$0xff]  }
 0x328   :  { %v2562_v40 = vmax.f32 %v2546_v38, 0.0  ;;  %v2547_v43 = vadd.f32 %v5583_v19, %v2499_v42  ;;  %4284 = vmatprep.subr.bf16.mxu1 %v4517_v47  ;;  %v4532_v18 = vld [vmem:[%s5766_s7 + $0x40] sm:$0xff]  }
 0x329   :  { %2581 = vst.msk [vmem:[#allocation3 + $0x7a] sm:$0xff] %vm2566_vm3, %v2564_v14  ;;  %v2565_v9 = vmax.f32 %v2549_v15, 0.0 }
 0x32a   :  { %2579 = vst.msk [vmem:[#allocation3 + $0x6a] sm:$0xff] %vm2566_vm3, %v2562_v40  ;;  %v2563_v50 = vmax.f32 %v2547_v43, 0.0  ;;  %v2820_v6 = vld [vmem:[#allocation3 + $0x5a] ss:$2 sm:$0xff]  ;;  %v2942_v60 = vld [vmem:[#allocation3 + $0x5b] ss:$2 sm:$0xff] }
 0x32b   :  { %2582 = vst.msk [vmem:[#allocation3 + $0x82] sm:$0xff] %vm2566_vm3, %v2565_v9  ;;  %v2615_v37 = vld [vmem:[#allocation3 + $0x49] ss:$2 sm:$0xff]  ;;  %v2617_v11 = vld [vmem:[#allocation3 + $0x59] ss:$2 sm:$0xff]  ;;  %4285 = vmatpush3.bf16.msra.mxu1 %v4517_v47 }
 0x32c   :  { %2580 = vst.msk [vmem:[#allocation3 + $0x72] sm:$0xff] %vm2566_vm3, %v2563_v50  ;;  %v2624_v36 = vpack.c.bf16 %v2617_v11, %v2615_v37  ;;  %4294 = vmatprep.subr.bf16.mxu1 %v4518_v44  ;;  %v2591_v57 = vld [vmem:[#allocation3 + $0x48] ss:$2 sm:$0xff]  ;;  %v2593_v58 = vld [vmem:[#allocation3 + $0x58] ss:$2 sm:$0xff] }
 0x32d   :  { %v2600_v34 = vpack.c.bf16 %v2593_v58, %v2591_v57  ;;  %v2818_v2 = vld [vmem:[#allocation3 + $0x4a] ss:$2 sm:$0xff]  ;;  %v2940_v20 = vld [vmem:[#allocation3 + $0x4b] ss:$2 sm:$0xff]  ;;  %v4526_v9 = vld [vmem:[%s5766_s7 + $0x30] sm:$0xff]  }
 0x32e   :  { %4278 = vmatprep.mubr.msk.bf16.mxu1 %vm2566_vm3, %v2624_v36  ;;  %v2827_v5 = vpack.c.bf16 %v2820_v6, %v2818_v2  ;;  %v2949_v63 = vpack.c.bf16 %v2942_v60, %v2940_v20  ;;  %v3058_v47 = vld [vmem:[#allocation3 + $0x24] ss:$2 sm:$0xff] }
 0x32f   :  { %v3070_v38 = vpack.c.bf16 %v3060_v31, %v3058_v47  ;;  %v3062_v23 = vld [vmem:[#allocation3 + $0x4c] ss:$2 sm:$0xff] }
 0x330   :  { %v4524_v43 = vld [vmem:[%s5766_s7 + $0x20] sm:$0xff]   ;;  %v4527_v50 = vld [vmem:[%s5766_s7 + $0x38] sm:$0xff]  }
 0x331   :  { %v3064_v39 = vld [vmem:[#allocation3 + $0x5c] ss:$2 sm:$0xff]  ;;  %v4011_v37 = vld [vmem:[%s5765_s6] ss:$0 sm:$0xff] }
 0x332   :  { %v2824_v56 = vld [vmem:[#allocation3 + $0x7a] ss:$2 sm:$0xff]  ;;  %v2946_v29 = vld [vmem:[#allocation3 + $0x7b] ss:$2 sm:$0xff]  ;;  %v3071_v14 = vpack.c.bf16 %v3064_v39, %v3062_v23 }
 0x333   :  { %v2619_v35 = vld [vmem:[#allocation3 + $0x69] ss:$2 sm:$0xff]  ;;  %v2621_v19 = vld [vmem:[#allocation3 + $0x79] ss:$2 sm:$0xff]  ;;  %v2595_v48 = vld [vmem:[#allocation3 + $0x68] ss:$2 sm:$0xff] }
 0x334   :  { %v2625_v30 = vpack.c.bf16 %v2621_v19, %v2619_v35  ;;  %v2597_v53 = vld [vmem:[#allocation3 + $0x78] ss:$2 sm:$0xff]  ;;  %v2944_v55 = vld [vmem:[#allocation3 + $0x6b] ss:$2 sm:$0xff] }
 0x335   :  { %v2601_v59 = vpack.c.bf16 %v2597_v53, %v2595_v48  ;;  %v2822_v8 = vld [vmem:[#allocation3 + $0x6a] ss:$2 sm:$0xff]  ;;  %v2950_v24 = vpack.c.bf16 %v2946_v29, %v2944_v55  ;;  %v4534_v29 = vld [vmem:[%s5766_s7 + $0x50] sm:$0xff]  }
 0x336   :  { %4279 = vmatmul.mubr.msk.bf16.gmra.mrb[4].mxu1 %vm2566_vm3, %v2625_v30  ;;  %v2828_v27 = vpack.c.bf16 %v2824_v56, %v2822_v8  ;;  %v3066_v15 = vld [vmem:[#allocation3 + $0x6c] ss:$2 sm:$0xff]  ;;  %v3068_v42 = vld [vmem:[#allocation3 + $0x7c] ss:$2 sm:$0xff] }
 0x337   :  { %4286 = vmatprep.mubr.msk.bf16.mxu1 %vm2566_vm3, %v2598_v61  ;;  %v3072_v40 = vpack.c.bf16 %v3068_v42, %v3066_v15  ;;  %v4539_v15 = vld [vmem:[%s5766_s7 + $0x78] sm:$0xff]   ;;  %v4540_v42 = vld [vmem:[%s5766_s7 + $0x80] sm:$0xff]  }
 0x33e   :  { %4287 = vmatmul.mubr.msk.bf16.vlgmr.msra.gmra.mrb[0].mxu1 %vm2566_vm3, %v2599_v52 }
 0x33f   :  { %4295 = vmatpush3.bf16.msra.mxu1 %v4518_v44  ;;  %4290 = vmatprep.mubr.msk.bf16.mxu1 %vm2566_vm3, %v2600_v34  ;;  %v4525_v44 = vld [vmem:[%s5766_s7 + $0x28] sm:$0xff]  }
 0x340   :  { %4296 = vmatprep.subr.bf16.mxu1 %v4519_v21 }
 0x343   :  { %4297 = vmatpush3.bf16.msra.mxu1 %v4519_v21 }
 0x344   :  { %4306 = vmatprep.subr.bf16.mxu1 %v4520_v32 }
 0x346   :  { %4291 = vmatmul.mubr.msk.bf16.gmra.mrb[4].mxu1 %vm2566_vm3, %v2601_v59 }
 0x347   :  { %4298 = vmatprep.mubr.msk.bf16.mxu1 %vm2566_vm3, %v2825_v46 }
 0x34e   :  { %4299 = vmatmul.mubr.msk.bf16.vlgmr.msra.gmra.mrb[0].mxu1 %vm2566_vm3, %v2826_v33 }
 0x34f   :  { %4307 = vmatpush3.bf16.msra.mxu1 %v4520_v32  ;;  %4302 = vmatprep.mubr.msk.bf16.mxu1 %vm2566_vm3, %v2827_v5 }
 0x350   :  { %4308 = vmatprep.subr.bf16.mxu1 %v4521_v26 }
 0x353   :  { %4309 = vmatpush3.bf16.msra.mxu1 %v4521_v26 }
 0x354   :  { %4318 = vmatprep.subr.bf16.mxu1 %v4522_v10 }
 0x356   :  { %4303 = vmatmul.mubr.msk.bf16.gmra.mrb[4].mxu1 %vm2566_vm3, %v2828_v27  ;;  %v4530_v27 = vld [vmem:[%s5766_s7 + $0x10] sm:$0xff]  }
 0x357   :  { %4310 = vmatprep.mubr.msk.bf16.mxu1 %vm2566_vm3, %v2947_v62  ;;  %v4531_v62 = vld [vmem:[%s5766_s7 + $0x18] sm:$0xff]  }
 0x35e   :  { %4311 = vmatmul.mubr.msk.bf16.vlgmr.msra.gmra.mrb[0].mxu1 %vm2566_vm3, %v2948_v3 }
 0x35f   :  { %4319 = vmatpush3.bf16.msra.mxu1 %v4522_v10  ;;  %4314 = vmatprep.mubr.msk.bf16.mxu1 %vm2566_vm3, %v2949_v63  ;;  %v4533_v63 = vld [vmem:[%s5766_s7 + $0x48] sm:$0xff]  }
 0x360   :  { %4320 = vmatprep.subr.bf16.mxu1 %v4523_v0 }
 0x363   :  { %4321 = vmatpush3.bf16.msra.mxu1 %v4523_v0 }
 0x364   :  { %4330 = vmatprep.subr.bf16.mxu1 %v4524_v43 }
 0x366   :  { %4315 = vmatmul.mubr.msk.bf16.gmra.mrb[4].mxu1 %vm2566_vm3, %v2950_v24  ;;  %v4536_v24 = vld [vmem:[%s5766_s7 + $0x60] sm:$0xff]  }
 0x367   :  { %4322 = vmatprep.mubr.msk.bf16.mxu1 %vm2566_vm3, %v3069_v12 }
 0x36e   :  { %4323 = vmatmul.mubr.msk.bf16.vlgmr.msra.gmra.mrb[0].mxu1 %vm2566_vm3, %v3070_v38  ;;  %v4537_v38 = vld [vmem:[%s5766_s7 + $0x68] sm:$0xff]  }
 0x36f   :  { %4326 = vmatprep.mubr.msk.bf16.mxu1 %vm2566_vm3, %v3071_v14  ;;  %4331 = vmatpush3.bf16.msra.mxu1 %v4524_v43  ;;  %v4538_v14 = vld [vmem:[%s5766_s7 + $0x70] sm:$0xff]  }
 0x370   :  { %4332 = vmatprep.subr.bf16.mxu1 %v4525_v44 }
 0x373   :  { %4333 = vmatpush3.bf16.msra.mxu1 %v4525_v44 }
 0x374   :  { %4334 = vmatprep.subr.bf16.mxu1 %v4526_v9 }
 0x376   :  { %4327 = vmatmul.mubr.msk.bf16.gmra.mrb[4].mxu1 %vm2566_vm3, %v3072_v40 }
 0x377   :  { %4335 = vmatpush3.bf16.msra.mxu1 %v4526_v9 }
 0x378   :  { %4336 = vmatprep.subr.bf16.mxu1 %v4527_v50 }
 0x37b   :  { %4337 = vmatpush3.bf16.msra.mxu1 %v4527_v50 }
 0x37c   :  { %4342 = vmatprep.subr.bf16.mxu1 %v4528_v41 }
 0x441   :  { %v4324_v11 = vpop.f32.mrb[0].mxu1 }
 0x442   :  { %v3184_v36 = vadd.f32 %v4324_v11, %v4011_v37  ;;  %v3136_v28 = vpop.f32.mrb[1].mxu1  ;;  %v4542_v11 = vld [vmem:[%s5766_s7 + $0x90] sm:$0xff]  }
 0x443   :  { %v3182_v45 = vadd.f32 %v4011_v37, %v3136_v28  ;;  %v4325_v35 = vpop.f32.mrb[2].mxu1 }
 0x444   :  { %v3192_v19 = vmax.f32 %v3184_v36, 0.0  ;;  %v3185_v30 = vadd.f32 %v4325_v35, %v4011_v37  ;;  %v3139_v61 = vpop.f32.mrb[3].mxu1  ;;  %v4543_v36 = vld [vmem:[%s5766_s7 + $0x98] sm:$0xff]  }
 0x445   :  { %v3190_v22 = vmax.f32 %v3182_v45, 0.0  ;;  %v3183_v25 = vadd.f32 %v4011_v37, %v3139_v61 }
 0x446   :  { %3201 = vst.msk [vmem:[#allocation4 + $0x12] sm:$0xff] %vm3198_vm5, %v3192_v19  ;;  %v3193_v57 = vmax.f32 %v3185_v30, 0.0  ;;  %v4074_v19 = vld [vmem:[%s5767_s8] ss:$0 sm:$0xff] }
 0x447   :  { %3199 = vst.msk [vmem:[#allocation4 + $0x2] sm:$0xff] %vm3198_vm5, %v3190_v22  ;;  %v3191_v58 = vmax.f32 %v3183_v25, 0.0 }
 0x448   :  { %3202 = vst.msk [vmem:[#allocation4 + $0x1a] sm:$0xff] %vm3198_vm5, %v3193_v57 }
 0x449   :  { %3200 = vst.msk [vmem:[#allocation4 + $0xa] sm:$0xff] %vm3198_vm5, %v3191_v58  ;;  %v4328_v52 = vpop.f32.mrb[4].mxu1 }
 0x44a   :  { %v3188_v21 = vadd.f32 %v4328_v52, %v4011_v37  ;;  %v3152_v34 = vpop.f32.mrb[5].mxu1 }
 0x44b   :  { %v3186_v32 = vadd.f32 %v4011_v37, %v3152_v34  ;;  %v4329_v48 = vpop.f32.mrb[6].mxu1 }
 0x44c   :  { %v3196_v53 = vmax.f32 %v3188_v21, 0.0  ;;  %v3189_v49 = vadd.f32 %v4329_v48, %v4011_v37  ;;  %v3155_v1 = vpop.f32.mrb[7].mxu1 }
 0x44d   :  { %v3194_v59 = vmax.f32 %v3186_v32, 0.0  ;;  %v3187_v46 = vadd.f32 %v4011_v37, %v3155_v1 }
 0x44e   :  { %3205 = vst.msk [vmem:[#allocation4 + $0x3a] sm:$0xff] %vm3198_vm5, %v3196_v53  ;;  %v3197_v4 = vmax.f32 %v3189_v49, 0.0 }
 0x44f   :  { %3203 = vst.msk [vmem:[#allocation4 + $0x2a] sm:$0xff] %vm3198_vm5, %v3194_v59  ;;  %v3195_v16 = vmax.f32 %v3187_v46, 0.0  ;;  %v3404_v3 = vld [vmem:[#allocation4 + $0x12] ss:$2 sm:$0xff]  ;;  %v3506_v31 = vld [vmem:[#allocation4 + $0x13] ss:$2 sm:$0xff] }
 0x450   :  { %3206 = vst.msk [vmem:[#allocation4 + $0x42] sm:$0xff] %vm3198_vm5, %v3197_v4  ;;  %v3225_v2 = vld [vmem:[#allocation4 + $0x1] ss:$2 sm:$0xff]  ;;  %v3227_v6 = vld [vmem:[#allocation4 + $0x11] ss:$2 sm:$0xff] }
 0x451   :  { %3204 = vst.msk [vmem:[#allocation4 + $0x32] sm:$0xff] %vm3198_vm5, %v3195_v16  ;;  %v3232_v33 = vpack.c.bf16 %v3227_v6, %v3225_v2  ;;  %v3207_v26 = vld [vmem:[#allocation4] ss:$2 sm:$0xff]  ;;  %v3209_v5 = vld [vmem:[#allocation4 + $0x10] ss:$2 sm:$0xff] }
 0x452   :  { %v3214_v17 = vpack.c.bf16 %v3209_v5, %v3207_v26  ;;  %v3402_v60 = vld [vmem:[#allocation4 + $0x2] ss:$2 sm:$0xff]  ;;  %v3504_v47 = vld [vmem:[#allocation4 + $0x3] ss:$2 sm:$0xff] }
 0x453   :  { %4338 = vmatprep.mubr.msk.bf16.mxu1 %vm3198_vm5, %v3232_v33  ;;  %v3409_v55 = vpack.c.bf16 %v3404_v3, %v3402_v60  ;;  %v3511_v23 = vpack.c.bf16 %v3506_v31, %v3504_v47  ;;  %v3606_v44 = vld [vmem:[#allocation4 + $0x4] ss:$2 sm:$0xff]  ;;  %v3608_v9 = vld [vmem:[#allocation4 + $0x14] ss:$2 sm:$0xff] }
 0x454   :  { %v3613_v37 = vpack.c.bf16 %v3608_v9, %v3606_v44 }
 0x457   :  { %v3408_v12 = vld [vmem:[#allocation4 + $0x3a] ss:$2 sm:$0xff]  ;;  %v3510_v43 = vld [vmem:[#allocation4 + $0x3b] ss:$2 sm:$0xff] }
 0x458   :  { %v3229_v10 = vld [vmem:[#allocation4 + $0x29] ss:$2 sm:$0xff]  ;;  %v3231_v8 = vld [vmem:[#allocation4 + $0x39] ss:$2 sm:$0xff]  ;;  %v3211_v13 = vld [vmem:[#allocation4 + $0x28] ss:$2 sm:$0xff] }
 0x459   :  { %v3233_v56 = vpack.c.bf16 %v3231_v8, %v3229_v10  ;;  %v3213_v20 = vld [vmem:[#allocation4 + $0x38] ss:$2 sm:$0xff]  ;;  %v3508_v40 = vld [vmem:[#allocation4 + $0x2b] ss:$2 sm:$0xff] }
 0x45a   :  { %v3215_v0 = vpack.c.bf16 %v3213_v20, %v3211_v13  ;;  %v3406_v7 = vld [vmem:[#allocation4 + $0x2a] ss:$2 sm:$0xff]  ;;  %v3512_v50 = vpack.c.bf16 %v3510_v43, %v3508_v40 }
 0x45b   :  { %4339 = vmatmul.mubr.msk.bf16.vlgmr.msra.gmra.mrb[8].mxu1 %vm3198_vm5, %v3233_v56  ;;  %v3410_v39 = vpack.c.bf16 %v3408_v12, %v3406_v7  ;;  %v3610_v28 = vld [vmem:[#allocation4 + $0x2c] ss:$2 sm:$0xff]  ;;  %v3612_v45 = vld [vmem:[#allocation4 + $0x3c] ss:$2 sm:$0xff] }
 0x45c   :  { %4343 = vmatpush3.bf16.msra.mxu1 %v4528_v41  ;;  %4350 = vmatprep.mubr.msk.bf16.mxu1 %vm3198_vm5, %v3214_v17  ;;  %v4541_v41 = vld [vmem:[%s5766_s7 + $0x88] sm:$0xff]   ;;  %v3614_v35 = vpack.c.bf16 %v3612_v45, %v3610_v28  ;;  %s4576_s7 = smov [#allocation5]  }
 0x45d   :  { %4344 = vmatprep.subr.bf16.mxu1 %v4529_v54  ;;  %s3731_s10 = sshll.u32 %s4576_s7, 4  ;;  %s3732_s10 = int_to_ptr.vmem [resolvable:$true] %s3731_s10 }
 0x45e   :  { %s4550_s8 = scalar_lea.vmem %s3732_s10, 512  ;;  %p4555_p1 = scmp.lt.s32.totalorder %s3732_s10, %s3732_s10 }
 0x45f   :  { %p4551_p0 = scmp.ne.s32.totalorder %s3732_s10, %s4550_s8  ;;  %p4556_p2 = scmp.lt.s32.totalorder %s4550_s8, %s4550_s8 }
 0x460   :  { %4345 = vmatpush3.bf16.msra.mxu1 %v4529_v54 }
 0x461   :  { %4346 = vmatprep.subr.bf16.mxu1 %v4530_v27  ;;  %p4557_p3 = por %p4556_p2, %p4555_p1 }
 0x463   :  { %p4558_p4 = pnand %p4557_p3, %p4551_p0 }
 0x464   :  { %4347 = vmatpush3.bf16.msra.mxu1 %v4530_v27 }
 0x465   :  { %4348 = vmatprep.subr.bf16.mxu1 %v4531_v62 }
 0x468   :  { %4349 = vmatpush3.bf16.msra.mxu1 %v4531_v62 }
 0x469   :  { %4354 = vmatprep.subr.bf16.mxu1 %v4532_v18 }
 0x46b   :  { %4351 = vmatmul.mubr.msk.bf16.vlgmr.msra.gmra.mrb[8].mxu1 %vm3198_vm5, %v3215_v0 }
 0x46c   :  { %4355 = vmatpush3.bf16.msra.mxu1 %v4532_v18  ;;  %4362 = vmatprep.mubr.msk.bf16.mxu1 %vm3198_vm5, %v3409_v55 }
 0x46d   :  { %4356 = vmatprep.subr.bf16.mxu1 %v4533_v63 }
 0x470   :  { %4357 = vmatpush3.bf16.msra.mxu1 %v4533_v63 }
 0x471   :  { %4358 = vmatprep.subr.bf16.mxu1 %v4534_v29 }
 0x474   :  { %4359 = vmatpush3.bf16.msra.mxu1 %v4534_v29 }
 0x475   :  { %4360 = vmatprep.subr.bf16.mxu1 %v4535_v51 }
 0x478   :  { %4361 = vmatpush3.bf16.msra.mxu1 %v4535_v51 }
 0x479   :  { %4366 = vmatprep.subr.bf16.mxu1 %v4536_v24 }
 0x47b   :  { %4363 = vmatmul.mubr.msk.bf16.vlgmr.msra.gmra.mrb[8].mxu1 %vm3198_vm5, %v3410_v39 }
 0x47c   :  { %4367 = vmatpush3.bf16.msra.mxu1 %v4536_v24  ;;  %4374 = vmatprep.mubr.msk.bf16.mxu1 %vm3198_vm5, %v3511_v23 }
 0x47d   :  { %4368 = vmatprep.subr.bf16.mxu1 %v4537_v38 }
 0x480   :  { %4369 = vmatpush3.bf16.msra.mxu1 %v4537_v38 }
 0x481   :  { %4370 = vmatprep.subr.bf16.mxu1 %v4538_v14 }
 0x484   :  { %4371 = vmatpush3.bf16.msra.mxu1 %v4538_v14 }
 0x485   :  { %4372 = vmatprep.subr.bf16.mxu1 %v4539_v15 }
 0x488   :  { %4373 = vmatpush3.bf16.msra.mxu1 %v4539_v15 }
 0x489   :  { %4378 = vmatprep.subr.bf16.mxu1 %v4540_v42 }
 0x48b   :  { %4375 = vmatmul.mubr.msk.bf16.vlgmr.msra.gmra.mrb[8].mxu1 %vm3198_vm5, %v3512_v50 }
 0x48c   :  { %4379 = vmatpush3.bf16.msra.mxu1 %v4540_v42  ;;  %4386 = vmatprep.mubr.msk.bf16.mxu1 %vm3198_vm5, %v3613_v37 }
 0x48d   :  { %4380 = vmatprep.subr.bf16.mxu1 %v4541_v41 }
 0x490   :  { %4381 = vmatpush3.bf16.msra.mxu1 %v4541_v41 }
 0x491   :  { %4382 = vmatprep.subr.bf16.mxu1 %v4542_v11 }
 0x494   :  { %4383 = vmatpush3.bf16.msra.mxu1 %v4542_v11 }
 0x495   :  { %4384 = vmatprep.subr.bf16.mxu1 %v4543_v36 }
 0x498   :  { %4385 = vmatpush3.bf16.msra.mxu1 %v4543_v36 }
 0x49b   :  { %4387 = vmatmul.mubr.msk.bf16.vlgmr.msra.gmra.mrb[8].mxu1 %vm3198_vm5, %v3614_v35 }
 0x56e   :  { %v4388_v30 = vpop.f32.mrb[8].mxu1 }
 0x56f   :  { %v3716_v61 = vadd.f32 %v4388_v30, %v4074_v19  ;;  %v3688_v22 = vpop.f32.mrb[9].mxu1 }
 0x570   :  { %v3714_v25 = vadd.f32 %v4074_v19, %v3688_v22  ;;  %v4389_v57 = vpop.f32.mrb[10].mxu1 }
 0x571   :  { %v3720_v58 = vmax.f32 %v3716_v61, 0.0  ;;  %v3717_v52 = vadd.f32 %v4389_v57, %v4074_v19  ;;  %v3691_v21 = vpop.f32.mrb[11].mxu1 }
 0x572   :  { %v3718_v34 = vmax.f32 %v3714_v25, 0.0  ;;  %v3715_v32 = vadd.f32 %v4074_v19, %v3691_v21 }
 0x573   :  { %3724 = vst [vmem:[#allocation5 + $0x10] sm:$0xff] %v3720_v58  ;;  %v3721_v48 = vmax.f32 %v3717_v52, 0.0 }
 0x574   :  { %3722 = vst [vmem:[#allocation5] sm:$0xff] %v3718_v34  ;;  %v3719_v53 = vmax.f32 %v3715_v32, 0.0 }
 0x575   :  { %3725 = vst [vmem:[#allocation5 + $0x18] sm:$0xff] %v3721_v48 }
 0x576   :  { %3723 = vst [vmem:[#allocation5 + $0x8] sm:$0xff] %v3719_v53 }
 0x577   :  { %4561 = shalt.err (!%p4558_p4)
}
 0x578   :  { %s4562_s13 = scalar_lea.hbm %s5768_s9, 512 }
 0x579   :  { %p4563_p5 = scmp.ne.s32.totalorder %s5768_s9, %s4562_s13  ;;  %p4566_p6 = scmp.lt.u32.totalorder %s4562_s13, %s5768_s9 }
 0x57b   :  { %p4568_p7 = pnand %p4566_p6, %p4563_p5 }
 0x57d   :  { %4571 = shalt.err (!%p4568_p7)
}
 0x57e   :  { %s4577_s18 = smov 128   ;;  %s4578_s19 = smov 8  }
 0x57f   :  { %3737 = dma.vmem_to_hbm [thread:$0]  %s3732_s10, 512, %s5768_s9, [#allocation6], %s4577_s18, %s4577_s18, %s4578_s19  }
 0x580   :  { %4572 = dma.done.wait [#allocation6], 512  }
 0x581   :  { %4573 = vsyncadd [#allocation6], 4294966784 }
 0x582   :  { %3741 = vsyncpa [#allocation6], 1 }

</bundles_post_ra>
